<compile_context>
chip_gen: v6e
topology: v6e:2x2x1
jax: 0.10.0
libtpu: 0.0.40
codegen_flags: <defaults>
</compile_context>

<pallas_src>
from functools import partial

import jax
import jax.numpy as jnp
from jax.experimental import pallas as pl
from jax.experimental.pallas import tpu as pltpu

EMB = 64
CONS_NFEATS = 5
EDGE_NFEATS = 1
VAR_NFEATS = 17


# ----------------------------- fused Pallas kernel -----------------------------

def gnn_fused_kernel(
    cons_feat_ref, var_feat_ref, ew_ref,
    ec_col_ref, ev_col_ref, seg_row_ref, invc_ref,
    e_scale_ref, e_bias_ref,
    cons_w1_ref, cons_b1_ref, cons_w2_ref, cons_b2_ref,
    var_w1_ref, var_b1_ref, var_w2_ref, var_b2_ref,
    v2c_wrel_ref, v2c_wroot_ref, v2c_brel_ref,
    c2v_wrel_ref, c2v_wroot_ref, c2v_brel_ref,
    out_w1_ref, out_b1_ref, out_w2t_ref,
    out_ref,
    *, mxu_dtype,
):
    f32 = jnp.float32
    mdt = mxu_dtype
    E = ew_ref.shape[0]
    nc = cons_feat_ref.shape[0]
    nv = var_feat_ref.shape[0]
    G = out_ref.shape[1]

    def mm(a, b):  # MXU matmul: narrow operands, f32 accumulation
        return jnp.dot(a.astype(mdt), b.astype(mdt), preferred_element_type=f32)

    # ---- node embeddings (PreNorm already folded into W1/b1 on host) ----
    cx = jnp.maximum(mm(cons_feat_ref[...], cons_w1_ref[...]) + cons_b1_ref[...], 0.0)
    cons_x = jnp.maximum(mm(cx, cons_w2_ref[...]) + cons_b2_ref[...], 0.0)      # (nc,64) f32
    vx = jnp.maximum(mm(var_feat_ref[...], var_w1_ref[...]) + var_b1_ref[...], 0.0)
    var_x = jnp.maximum(mm(vx, var_w2_ref[...]) + var_b2_ref[...], 0.0)         # (nv,64) f32

    # ---- edge PreNorm (scalar affine), scalars read from SMEM ----
    ew_n = ew_ref[...] * e_scale_ref[0, 0] + e_bias_ref[0, 0]                   # (E,1) f32

    # ---- two UNWEIGHTED one-hots, each reused for one gather + one scatter ----
    oh_ev = (ev_col_ref[...] ==
             jax.lax.broadcasted_iota(jnp.int32, (E, nv), 1)).astype(f32)       # (E,nv)
    oh_ec = (ec_col_ref[...] ==
             jax.lax.broadcasted_iota(jnp.int32, (E, nc), 1)).astype(f32)       # (E,nc)
    dn_scatter = (((0,), (0,)), ((), ()))   # contract over the edge axis (lhs-T matmul)

    # ---- conv_v_to_c : gather var_x[ev], edge-weight in f32, scatter onto cons ----
    msgs = mm(oh_ev, var_x) * ew_n                                              # (E,64) f32
    agg = jax.lax.dot_general(oh_ec.astype(mdt), msgs.astype(mdt), dn_scatter,
                              preferred_element_type=f32)                       # (nc,64)
    cons_x = jnp.maximum(
        mm(agg, v2c_wrel_ref[...]) + mm(cons_x, v2c_wroot_ref[...])
        + v2c_brel_ref[...], 0.0)

    # ---- conv_c_to_v : gather cons_x[ec], edge-weight in f32, scatter onto vars ----
    msgs2 = mm(oh_ec, cons_x) * ew_n                                            # (E,64) f32
    agg2 = jax.lax.dot_general(oh_ev.astype(mdt), msgs2.astype(mdt), dn_scatter,
                               preferred_element_type=f32)                      # (nv,64)
    var_x = jnp.maximum(
        mm(agg2, c2v_wrel_ref[...]) + mm(var_x, c2v_wroot_ref[...])
        + c2v_brel_ref[...], 0.0)

    # ---- output MLP + per-graph mean pooling (pool-first, lane-dense (1,G) store) ----
    h = jnp.maximum(mm(var_x, out_w1_ref[...]) + out_b1_ref[...], 0.0)          # (nv,64)
    seg_oh = (seg_row_ref[...] ==
              jax.lax.broadcasted_iota(jnp.int32, (G, nv), 0)).astype(f32)      # (G,nv)
    pooled = mm(seg_oh, h)                                                      # (G,64)
    weighted = pooled * invc_ref[...]                                           # per-graph mean
    # (1,64) . (G,64)^T -> (1,G): tiny final linear (no bias), kept in f32.
    out_ref[...] = jax.lax.dot_general(out_w2t_ref[...], weighted,
                                       (((1,), (1,)), ((), ())),
                                       preferred_element_type=f32)


# ----------------------------- wrapper / glue -----------------------------

def _vmem_limit_bytes(e, nc, nv, g, mxu_bytes):
    est = (mxu_bytes * e * (nc + nv)        # the two deduped one-hot tiles
           + 4 * 4 * e * EMB                # gathered rows / edge messages (f32 temps)
           + 4 * 8 * (nc + nv) * EMB        # node activations / temporaries
           + 4 * (g * nv + g * EMB)         # pooling one-hot + pooled
           + 4 * 80 * 1024)                 # weights / biases
    est = 2 * est + (8 << 20)               # layout copies + compiler scratch headroom
    try:
        # generation-aware cap: use most of 128 MiB on v5e/v6e, ~52 MiB on v7x
        cap = int(pltpu.get_tpu_info().vmem_capacity_bytes) - (12 << 20)
    except Exception:
        cap = 52 * 1024 * 1024              # conservative fallback, valid on all gens
    cap = max(cap, 32 * 1024 * 1024)
    return int(min(max(est, 16 * 1024 * 1024), cap))


def init_params(key):
    ks = jax.random.split(key, 20)

    def lin_w(k, fan_in, fan_out):
        return (jax.random.normal(k, (fan_in, fan_out), jnp.float32)
                / jnp.sqrt(jnp.float32(fan_in)))

    def lin_b(k, fan_out):
        return 0.1 * jax.random.normal(k, (1, fan_out), jnp.float32)

    p = {
        # PreNormLayer buffers (shift=zeros, scale=ones, as in __init__)
        "cons_shift": jnp.zeros((1, CONS_NFEATS), jnp.float32),
        "cons_scale": jnp.ones((1, CONS_NFEATS), jnp.float32),
        "edge_shift": jnp.zeros((1, EDGE_NFEATS), jnp.float32),
        "edge_scale": jnp.ones((1, EDGE_NFEATS), jnp.float32),
        "var_shift": jnp.zeros((1, VAR_NFEATS), jnp.float32),
        "var_scale": jnp.ones((1, VAR_NFEATS), jnp.float32),
        # cons_embedding
        "cons_w1": lin_w(ks[0], CONS_NFEATS, EMB), "cons_b1": lin_b(ks[1], EMB),
        "cons_w2": lin_w(ks[2], EMB, EMB),         "cons_b2": lin_b(ks[3], EMB),
        # var_embedding
        "var_w1": lin_w(ks[4], VAR_NFEATS, EMB),   "var_b1": lin_b(ks[5], EMB),
        "var_w2": lin_w(ks[6], EMB, EMB),          "var_b2": lin_b(ks[7], EMB),
        # conv_v_to_c : lin_rel (bias) + lin_root (no bias)
        "v2c_wrel": lin_w(ks[8], EMB, EMB),  "v2c_brel": lin_b(ks[9], EMB),
        "v2c_wroot": lin_w(ks[10], EMB, EMB),
        # conv_c_to_v
        "c2v_wrel": lin_w(ks[11], EMB, EMB), "c2v_brel": lin_b(ks[12], EMB),
        "c2v_wroot": lin_w(ks[13], EMB, EMB),
        # output_module
        "out_w1": lin_w(ks[14], EMB, EMB),   "out_b1": lin_b(ks[15], EMB),
        "out_w2": lin_w(ks[16], EMB, 1),     # bias=False
    }
    return p


@partial(jax.jit, static_argnames=("num_graphs", "use_bf16"))
def gnn_policy_forward(params, constraint_features, variable_features,
                       edge_features, edge_index, seg_ids, num_graphs,
                       use_bf16=True):
    """edge_index: (2, E) int32 -- row 0 = constraint idx, row 1 = variable idx.
       seg_ids: (Nv,) int32 graph id per variable node."""
    p = params
    f32 = jnp.float32
    mdt = jnp.bfloat16 if use_bf16 else jnp.float32
    nc = constraint_features.shape[0]
    nv = variable_features.shape[0]
    e = edge_features.shape[0]
    G = num_graphs

    # -- host-side (traced, one-time) prep: index layouts, counts, weight folds --
    ec_col = edge_index[0].astype(jnp.int32).reshape(e, 1)
    ev_col = edge_index[1].astype(jnp.int32).reshape(e, 1)
    seg_row = seg_ids.astype(jnp.int32).reshape(1, nv)
    counts = jnp.zeros((G,), f32).at[seg_ids].add(1.0)
    invc = (1.0 / jnp.maximum(counts, 1.0)).reshape(G, 1)

    def fold_prenorm(shift, scale, w1, b1):
        # (x + shift)*scale @ W1 + b1 == x @ (scale*W1) + (b1 + (shift*scale)@W1)
        return scale.reshape(-1, 1) * w1, b1 + (shift * scale) @ w1

    cons_w1p, cons_b1p = fold_prenorm(p["cons_shift"], p["cons_scale"],
                                      p["cons_w1"], p["cons_b1"])
    var_w1p, var_b1p = fold_prenorm(p["var_shift"], p["var_scale"],
                                    p["var_w1"], p["var_b1"])
    e_scale = p["edge_scale"].reshape(1, 1)
    e_bias = (p["edge_shift"] * p["edge_scale"]).reshape(1, 1)
    out_w2t = p["out_w2"].T                                   # (1, 64), stays f32

    cw = lambda w: w.astype(mdt)   # MXU-operand weights/features (halves DMA for bf16)

    args = (cw(constraint_features), cw(variable_features),
            edge_features.astype(f32),
            ec_col, ev_col, seg_row, invc, e_scale, e_bias,
            cw(cons_w1p), cons_b1p.astype(f32), cw(p["cons_w2"]), p["cons_b2"],
            cw(var_w1p), var_b1p.astype(f32), cw(p["var_w2"]), p["var_b2"],
            cw(p["v2c_wrel"]), cw(p["v2c_wroot"]), p["v2c_brel"],
            cw(p["c2v_wrel"]), cw(p["c2v_wroot"]), p["c2v_brel"],
            cw(p["out_w1"]), p["out_b1"], out_w2t)

    vmem_spec = pl.BlockSpec(memory_space=pltpu.MemorySpace.VMEM)
    smem_spec = pl.BlockSpec(memory_space=pltpu.MemorySpace.SMEM)
    in_specs = [vmem_spec] * 7 + [smem_spec, smem_spec] + [vmem_spec] * 17

    flops = 2 * (2 * e * (nc + nv) * EMB                       # gather+scatter, both convs
                 + nc * EMB * (CONS_NFEATS + 3 * EMB)          # cons MLP + node updates
                 + nv * EMB * (VAR_NFEATS + 4 * EMB)           # var MLP + updates + out MLP
                 + G * nv * EMB + G * EMB)                     # pooling + final linear
    bytes_accessed = sum(int(x.size) * x.dtype.itemsize for x in args) + 4 * G

    out = pl.pallas_call(
        partial(gnn_fused_kernel, mxu_dtype=mdt),
        out_shape=jax.ShapeDtypeStruct((1, G), f32),
        in_specs=in_specs,
        out_specs=vmem_spec,
        compiler_params=pltpu.CompilerParams(
            vmem_limit_bytes=_vmem_limit_bytes(e, nc, nv, G,
                                               2 if use_bf16 else 4)),
        cost_estimate=pl.CostEstimate(flops=int(flops), transcendentals=0,
                                      bytes_accessed=int(bytes_accessed)),
    )(*args)
    return out[0]                                              # (num_graphs,)


# TODO(synk): PreNormLayer.update_stats / pre-training mode (online mean/var
# accumulation) is training-time state mutation and is not implemented; only
# the inference forward path is reproduced.


# ----------------------------- pure-JAX reference -----------------------------

def _reference_forward(p, cons, var, ew, edge_index, seg_ids, num_graphs):
    def prenorm(x, shift, scale):
        return (x + shift) * scale

    def mlp(x, w1, b1, w2, b2):
        h = jnp.maximum(x @ w1 + b1, 0.0)
        return jnp.maximum(h @ w2 + b2, 0.0)

    cx = mlp(prenorm(cons, p["cons_shift"], p["cons_scale"]),
             p["cons_w1"], p["cons_b1"], p["cons_w2"], p["cons_b2"])
    vx = mlp(prenorm(var, p["var_shift"], p["var_scale"]),
             p["var_w1"], p["var_b1"], p["var_w2"], p["var_b2"])
    ewn = prenorm(ew, p["edge_shift"], p["edge_scale"])[:, 0]
    ec, ev = edge_index[0], edge_index[1]
    # v -> c
    msgs = ewn[:, None] * vx[ev]
    agg = jnp.zeros_like(cx).at[ec].add(msgs)
    cx = jnp.maximum(agg @ p["v2c_wrel"] + p["v2c_brel"] + cx @ p["v2c_wroot"], 0.0)
    # c -> v
    msgs = ewn[:, None] * cx[ec]
    agg = jnp.zeros_like(vx).at[ev].add(msgs)
    vx = jnp.maximum(agg @ p["c2v_wrel"] + p["c2v_brel"] + vx @ p["c2v_wroot"], 0.0)
    score = (jnp.maximum(vx @ p["out_w1"] + p["out_b1"], 0.0) @ p["out_w2"])[:, 0]
    sums = jnp.zeros((num_graphs,), jnp.float32).at[seg_ids].add(score)
    cnts = jnp.zeros((num_graphs,), jnp.float32).at[seg_ids].add(1.0)
    return sums / jnp.maximum(cnts, 1.0)


if __name__ == "__main__":
    key = jax.random.PRNGKey(0)
    k_p, k_c, k_v, k_e, k_ic, k_iv = jax.random.split(key, 6)

    # small synthetic bipartite MIP batch: 2 graphs
    n_cons, n_var, n_edges, n_graphs = 12, 20, 32, 2
    num_v_nodes = [8, 12]                                # sums to n_var
    seg_ids = jnp.concatenate(
        [jnp.full((n,), g, jnp.int32) for g, n in enumerate(num_v_nodes)])

    constraint_features = jax.random.normal(k_c, (n_cons, CONS_NFEATS), jnp.float32)
    variable_features = jax.random.normal(k_v, (n_var, VAR_NFEATS), jnp.float32)
    edge_features = jax.random.normal(k_e, (n_edges, EDGE_NFEATS), jnp.float32)
    edge_index = jnp.stack([
        jax.random.randint(k_ic, (n_edges,), 0, n_cons, jnp.int32),
        jax.random.randint(k_iv, (n_edges,), 0, n_var, jnp.int32)])

    params = init_params(k_p)

    ref = jax.block_until_ready(
        _reference_forward(params, constraint_features, variable_features,
                           edge_features, edge_index, seg_ids, n_graphs))

    # exact f32 path: tight check against the pure-JAX reference
    out_f32 = jax.block_until_ready(
        gnn_policy_forward(params, constraint_features, variable_features,
                           edge_features, edge_index, seg_ids, n_graphs,
                           use_bf16=False))
    assert out_f32.shape == (n_graphs,) and out_f32.dtype == jnp.float32
    assert bool(jnp.all(jnp.isfinite(out_f32)))
    assert bool(jnp.allclose(out_f32, ref, rtol=1e-4, atol=1e-4)), (out_f32, ref)

    # bf16-MXU fast path: looser tolerance (operand quantization only; f32 accumulate)
    out_bf16 = jax.block_until_ready(
        gnn_policy_forward(params, constraint_features, variable_features,
                           edge_features, edge_index, seg_ids, n_graphs,
                           use_bf16=True))
    assert out_bf16.shape == (n_graphs,) and out_bf16.dtype == jnp.float32
    assert bool(jnp.all(jnp.isfinite(out_bf16)))
    assert bool(jnp.allclose(out_bf16, ref, rtol=5e-2, atol=5e-2)), (out_bf16, ref)

    print("KERNEL_OK")
</pallas_src>

<mosaic_0001>
module attributes {stable_mosaic.version = 11 : i64} {
  func.func @gnn_fused_kernel(%arg0: memref<12x5xf32, #tpu.memory_space<vmem>>, %arg1: memref<20x17xf32, #tpu.memory_space<vmem>>, %arg2: memref<32x1xf32, #tpu.memory_space<vmem>>, %arg3: memref<32x1xi32, #tpu.memory_space<vmem>>, %arg4: memref<32x1xi32, #tpu.memory_space<vmem>>, %arg5: memref<1x20xi32, #tpu.memory_space<vmem>>, %arg6: memref<2x1xf32, #tpu.memory_space<vmem>>, %arg7: memref<1x1xf32, #tpu.memory_space<smem>>, %arg8: memref<1x1xf32, #tpu.memory_space<smem>>, %arg9: memref<5x64xf32, #tpu.memory_space<vmem>>, %arg10: memref<1x64xf32, #tpu.memory_space<vmem>>, %arg11: memref<64x64xf32, #tpu.memory_space<vmem>>, %arg12: memref<1x64xf32, #tpu.memory_space<vmem>>, %arg13: memref<17x64xf32, #tpu.memory_space<vmem>>, %arg14: memref<1x64xf32, #tpu.memory_space<vmem>>, %arg15: memref<64x64xf32, #tpu.memory_space<vmem>>, %arg16: memref<1x64xf32, #tpu.memory_space<vmem>>, %arg17: memref<64x64xf32, #tpu.memory_space<vmem>>, %arg18: memref<64x64xf32, #tpu.memory_space<vmem>>, %arg19: memref<1x64xf32, #tpu.memory_space<vmem>>, %arg20: memref<64x64xf32, #tpu.memory_space<vmem>>, %arg21: memref<64x64xf32, #tpu.memory_space<vmem>>, %arg22: memref<1x64xf32, #tpu.memory_space<vmem>>, %arg23: memref<64x64xf32, #tpu.memory_space<vmem>>, %arg24: memref<1x64xf32, #tpu.memory_space<vmem>>, %arg25: memref<1x64xf32, #tpu.memory_space<vmem>>, %arg26: memref<1x2xf32, #tpu.memory_space<vmem>>) attributes {dimension_semantics = [], scalar_prefetch = 0 : i64, scratch_operands = 0 : i64, tpu.core_type = #tpu.core_type<tc>} {
    %c0 = arith.constant 0 : index
    %c0_0 = arith.constant 0 : index
    %0 = vector.load %arg0[%c0, %c0_0] : memref<12x5xf32, #tpu.memory_space<vmem>>, vector<12x5xf32>
    %c0_1 = arith.constant 0 : index
    %c0_2 = arith.constant 0 : index
    %1 = vector.load %arg9[%c0_1, %c0_2] : memref<5x64xf32, #tpu.memory_space<vmem>>, vector<5x64xf32>
    %cst = arith.constant dense<0.000000e+00> : vector<12x64xf32>
    %2 = tpu.matmul %0, %1, %cst {dimension_numbers = #tpu.dot_dimension_numbers<[1], [0], [0], [1], [0, 0, 1, 1], [], []>} : vector<12x5xf32>, vector<5x64xf32>, vector<12x64xf32> -> vector<12x64xf32>
    %c0_3 = arith.constant 0 : index
    %c0_4 = arith.constant 0 : index
    %3 = vector.load %arg10[%c0_3, %c0_4] : memref<1x64xf32, #tpu.memory_space<vmem>>, vector<1x64xf32>
    %4 = vector.broadcast %3 : vector<1x64xf32> to vector<12x64xf32>
    %5 = arith.addf %2, %4 : vector<12x64xf32>
    %cst_5 = arith.constant 0.000000e+00 : f32
    %6 = vector.broadcast %cst_5 : f32 to vector<12x64xf32>
    %7 = arith.maximumf %5, %6 : vector<12x64xf32>
    %c0_6 = arith.constant 0 : index
    %c0_7 = arith.constant 0 : index
    %8 = vector.load %arg11[%c0_6, %c0_7] : memref<64x64xf32, #tpu.memory_space<vmem>>, vector<64x64xf32>
    %cst_8 = arith.constant dense<0.000000e+00> : vector<12x64xf32>
    %9 = tpu.matmul %7, %8, %cst_8 {dimension_numbers = #tpu.dot_dimension_numbers<[1], [0], [0], [1], [0, 0, 1, 1], [], []>} : vector<12x64xf32>, vector<64x64xf32>, vector<12x64xf32> -> vector<12x64xf32>
    %c0_9 = arith.constant 0 : index
    %c0_10 = arith.constant 0 : index
    %10 = vector.load %arg12[%c0_9, %c0_10] : memref<1x64xf32, #tpu.memory_space<vmem>>, vector<1x64xf32>
    %11 = vector.broadcast %10 : vector<1x64xf32> to vector<12x64xf32>
    %12 = arith.addf %9, %11 : vector<12x64xf32>
    %cst_11 = arith.constant 0.000000e+00 : f32
    %13 = vector.broadcast %cst_11 : f32 to vector<12x64xf32>
    %14 = arith.maximumf %12, %13 : vector<12x64xf32>
    %c0_12 = arith.constant 0 : index
    %c0_13 = arith.constant 0 : index
    %15 = vector.load %arg1[%c0_12, %c0_13] : memref<20x17xf32, #tpu.memory_space<vmem>>, vector<20x17xf32>
    %c0_14 = arith.constant 0 : index
    %c0_15 = arith.constant 0 : index
    %16 = vector.load %arg13[%c0_14, %c0_15] : memref<17x64xf32, #tpu.memory_space<vmem>>, vector<17x64xf32>
    %cst_16 = arith.constant dense<0.000000e+00> : vector<20x64xf32>
    %17 = tpu.matmul %15, %16, %cst_16 {dimension_numbers = #tpu.dot_dimension_numbers<[1], [0], [0], [1], [0, 0, 1, 1], [], []>} : vector<20x17xf32>, vector<17x64xf32>, vector<20x64xf32> -> vector<20x64xf32>
    %c0_17 = arith.constant 0 : index
    %c0_18 = arith.constant 0 : index
    %18 = vector.load %arg14[%c0_17, %c0_18] : memref<1x64xf32, #tpu.memory_space<vmem>>, vector<1x64xf32>
    %19 = vector.broadcast %18 : vector<1x64xf32> to vector<20x64xf32>
    %20 = arith.addf %17, %19 : vector<20x64xf32>
    %cst_19 = arith.constant 0.000000e+00 : f32
    %21 = vector.broadcast %cst_19 : f32 to vector<20x64xf32>
    %22 = arith.maximumf %20, %21 : vector<20x64xf32>
    %c0_20 = arith.constant 0 : index
    %c0_21 = arith.constant 0 : index
    %23 = vector.load %arg15[%c0_20, %c0_21] : memref<64x64xf32, #tpu.memory_space<vmem>>, vector<64x64xf32>
    %cst_22 = arith.constant dense<0.000000e+00> : vector<20x64xf32>
    %24 = tpu.matmul %22, %23, %cst_22 {dimension_numbers = #tpu.dot_dimension_numbers<[1], [0], [0], [1], [0, 0, 1, 1], [], []>} : vector<20x64xf32>, vector<64x64xf32>, vector<20x64xf32> -> vector<20x64xf32>
    %c0_23 = arith.constant 0 : index
    %c0_24 = arith.constant 0 : index
    %25 = vector.load %arg16[%c0_23, %c0_24] : memref<1x64xf32, #tpu.memory_space<vmem>>, vector<1x64xf32>
    %26 = vector.broadcast %25 : vector<1x64xf32> to vector<20x64xf32>
    %27 = arith.addf %24, %26 : vector<20x64xf32>
    %cst_25 = arith.constant 0.000000e+00 : f32
    %28 = vector.broadcast %cst_25 : f32 to vector<20x64xf32>
    %29 = arith.maximumf %27, %28 : vector<20x64xf32>
    %c0_26 = arith.constant 0 : index
    %c0_27 = arith.constant 0 : index
    %30 = vector.load %arg2[%c0_26, %c0_27] : memref<32x1xf32, #tpu.memory_space<vmem>>, vector<32x1xf32>
    %c0_28 = arith.constant 0 : index
    %c0_29 = arith.constant 0 : index
    %31 = memref.load %arg7[%c0_28, %c0_29] : memref<1x1xf32, #tpu.memory_space<smem>>
    %32 = vector.broadcast %31 : f32 to vector<32x1xf32>
    %33 = arith.mulf %30, %32 : vector<32x1xf32>
    %c0_30 = arith.constant 0 : index
    %c0_31 = arith.constant 0 : index
    %34 = memref.load %arg8[%c0_30, %c0_31] : memref<1x1xf32, #tpu.memory_space<smem>>
    %35 = vector.broadcast %34 : f32 to vector<32x1xf32>
    %36 = arith.addf %33, %35 : vector<32x1xf32>
    %c0_32 = arith.constant 0 : index
    %c0_33 = arith.constant 0 : index
    %37 = vector.load %arg4[%c0_32, %c0_33] : memref<32x1xi32, #tpu.memory_space<vmem>>, vector<32x1xi32>
    %38 = tpu.iota {dimensions = array<i32: 1>} : vector<32x20xi32>
    %39 = vector.broadcast %37 : vector<32x1xi32> to vector<32x20xi32>
    %40 = arith.cmpi eq, %39, %38 : vector<32x20xi32>
    %41 = arith.extui %40 : vector<32x20xi1> to vector<32x20xi32>
    %42 = arith.sitofp %41 : vector<32x20xi32> to vector<32x20xf32>
    %c0_34 = arith.constant 0 : index
    %c0_35 = arith.constant 0 : index
    %43 = vector.load %arg3[%c0_34, %c0_35] : memref<32x1xi32, #tpu.memory_space<vmem>>, vector<32x1xi32>
    %44 = tpu.iota {dimensions = array<i32: 1>} : vector<32x12xi32>
    %45 = vector.broadcast %43 : vector<32x1xi32> to vector<32x12xi32>
    %46 = arith.cmpi eq, %45, %44 : vector<32x12xi32>
    %47 = arith.extui %46 : vector<32x12xi1> to vector<32x12xi32>
    %48 = arith.sitofp %47 : vector<32x12xi32> to vector<32x12xf32>
    %cst_36 = arith.constant dense<0.000000e+00> : vector<32x64xf32>
    %49 = tpu.matmul %42, %29, %cst_36 {dimension_numbers = #tpu.dot_dimension_numbers<[1], [0], [0], [1], [0, 0, 1, 1], [], []>} : vector<32x20xf32>, vector<20x64xf32>, vector<32x64xf32> -> vector<32x64xf32>
    %50 = vector.broadcast %36 : vector<32x1xf32> to vector<32x64xf32>
    %51 = arith.mulf %49, %50 : vector<32x64xf32>
    %cst_37 = arith.constant dense<0.000000e+00> : vector<12x64xf32>
    %52 = tpu.matmul %48, %51, %cst_37 {dimension_numbers = #tpu.dot_dimension_numbers<[0], [0], [1], [1], [0, 1, 1, 1], [], []>} : vector<32x12xf32>, vector<32x64xf32>, vector<12x64xf32> -> vector<12x64xf32>
    %c0_38 = arith.constant 0 : index
    %c0_39 = arith.constant 0 : index
    %53 = vector.load %arg17[%c0_38, %c0_39] : memref<64x64xf32, #tpu.memory_space<vmem>>, vector<64x64xf32>
    %cst_40 = arith.constant dense<0.000000e+00> : vector<12x64xf32>
    %54 = tpu.matmul %52, %53, %cst_40 {dimension_numbers = #tpu.dot_dimension_numbers<[1], [0], [0], [1], [0, 0, 1, 1], [], []>} : vector<12x64xf32>, vector<64x64xf32>, vector<12x64xf32> -> vector<12x64xf32>
    %c0_41 = arith.constant 0 : index
    %c0_42 = arith.constant 0 : index
    %55 = vector.load %arg18[%c0_41, %c0_42] : memref<64x64xf32, #tpu.memory_space<vmem>>, vector<64x64xf32>
    %cst_43 = arith.constant dense<0.000000e+00> : vector<12x64xf32>
    %56 = tpu.matmul %14, %55, %cst_43 {dimension_numbers = #tpu.dot_dimension_numbers<[1], [0], [0], [1], [0, 0, 1, 1], [], []>} : vector<12x64xf32>, vector<64x64xf32>, vector<12x64xf32> -> vector<12x64xf32>
    %57 = arith.addf %54, %56 : vector<12x64xf32>
    %c0_44 = arith.constant 0 : index
    %c0_45 = arith.constant 0 : index
    %58 = vector.load %arg19[%c0_44, %c0_45] : memref<1x64xf32, #tpu.memory_space<vmem>>, vector<1x64xf32>
    %59 = vector.broadcast %58 : vector<1x64xf32> to vector<12x64xf32>
    %60 = arith.addf %57, %59 : vector<12x64xf32>
    %cst_46 = arith.constant 0.000000e+00 : f32
    %61 = vector.broadcast %cst_46 : f32 to vector<12x64xf32>
    %62 = arith.maximumf %60, %61 : vector<12x64xf32>
    %cst_47 = arith.constant dense<0.000000e+00> : vector<32x64xf32>
    %63 = tpu.matmul %48, %62, %cst_47 {dimension_numbers = #tpu.dot_dimension_numbers<[1], [0], [0], [1], [0, 0, 1, 1], [], []>} : vector<32x12xf32>, vector<12x64xf32>, vector<32x64xf32> -> vector<32x64xf32>
    %64 = vector.broadcast %36 : vector<32x1xf32> to vector<32x64xf32>
    %65 = arith.mulf %63, %64 : vector<32x64xf32>
    %cst_48 = arith.constant dense<0.000000e+00> : vector<20x64xf32>
    %66 = tpu.matmul %42, %65, %cst_48 {dimension_numbers = #tpu.dot_dimension_numbers<[0], [0], [1], [1], [0, 1, 1, 1], [], []>} : vector<32x20xf32>, vector<32x64xf32>, vector<20x64xf32> -> vector<20x64xf32>
    %c0_49 = arith.constant 0 : index
    %c0_50 = arith.constant 0 : index
    %67 = vector.load %arg20[%c0_49, %c0_50] : memref<64x64xf32, #tpu.memory_space<vmem>>, vector<64x64xf32>
    %cst_51 = arith.constant dense<0.000000e+00> : vector<20x64xf32>
    %68 = tpu.matmul %66, %67, %cst_51 {dimension_numbers = #tpu.dot_dimension_numbers<[1], [0], [0], [1], [0, 0, 1, 1], [], []>} : vector<20x64xf32>, vector<64x64xf32>, vector<20x64xf32> -> vector<20x64xf32>
    %c0_52 = arith.constant 0 : index
    %c0_53 = arith.constant 0 : index
    %69 = vector.load %arg21[%c0_52, %c0_53] : memref<64x64xf32, #tpu.memory_space<vmem>>, vector<64x64xf32>
    %cst_54 = arith.constant dense<0.000000e+00> : vector<20x64xf32>
    %70 = tpu.matmul %29, %69, %cst_54 {dimension_numbers = #tpu.dot_dimension_numbers<[1], [0], [0], [1], [0, 0, 1, 1], [], []>} : vector<20x64xf32>, vector<64x64xf32>, vector<20x64xf32> -> vector<20x64xf32>
    %71 = arith.addf %68, %70 : vector<20x64xf32>
    %c0_55 = arith.constant 0 : index
    %c0_56 = arith.constant 0 : index
    %72 = vector.load %arg22[%c0_55, %c0_56] : memref<1x64xf32, #tpu.memory_space<vmem>>, vector<1x64xf32>
    %73 = vector.broadcast %72 : vector<1x64xf32> to vector<20x64xf32>
    %74 = arith.addf %71, %73 : vector<20x64xf32>
    %cst_57 = arith.constant 0.000000e+00 : f32
    %75 = vector.broadcast %cst_57 : f32 to vector<20x64xf32>
    %76 = arith.maximumf %74, %75 : vector<20x64xf32>
    %c0_58 = arith.constant 0 : index
    %c0_59 = arith.constant 0 : index
    %77 = vector.load %arg23[%c0_58, %c0_59] : memref<64x64xf32, #tpu.memory_space<vmem>>, vector<64x64xf32>
    %cst_60 = arith.constant dense<0.000000e+00> : vector<20x64xf32>
    %78 = tpu.matmul %76, %77, %cst_60 {dimension_numbers = #tpu.dot_dimension_numbers<[1], [0], [0], [1], [0, 0, 1, 1], [], []>} : vector<20x64xf32>, vector<64x64xf32>, vector<20x64xf32> -> vector<20x64xf32>
    %c0_61 = arith.constant 0 : index
    %c0_62 = arith.constant 0 : index
    %79 = vector.load %arg24[%c0_61, %c0_62] : memref<1x64xf32, #tpu.memory_space<vmem>>, vector<1x64xf32>
    %80 = vector.broadcast %79 : vector<1x64xf32> to vector<20x64xf32>
    %81 = arith.addf %78, %80 : vector<20x64xf32>
    %cst_63 = arith.constant 0.000000e+00 : f32
    %82 = vector.broadcast %cst_63 : f32 to vector<20x64xf32>
    %83 = arith.maximumf %81, %82 : vector<20x64xf32>
    %c0_64 = arith.constant 0 : index
    %c0_65 = arith.constant 0 : index
    %84 = vector.load %arg5[%c0_64, %c0_65] : memref<1x20xi32, #tpu.memory_space<vmem>>, vector<1x20xi32>
    %85 = tpu.iota {dimensions = array<i32: 0>} : vector<2x20xi32>
    %86 = vector.broadcast %84 : vector<1x20xi32> to vector<2x20xi32>
    %87 = arith.cmpi eq, %86, %85 : vector<2x20xi32>
    %88 = arith.extui %87 : vector<2x20xi1> to vector<2x20xi32>
    %89 = arith.sitofp %88 : vector<2x20xi32> to vector<2x20xf32>
    %cst_66 = arith.constant dense<0.000000e+00> : vector<2x64xf32>
    %90 = tpu.matmul %89, %83, %cst_66 {dimension_numbers = #tpu.dot_dimension_numbers<[1], [0], [0], [1], [0, 0, 1, 1], [], []>} : vector<2x20xf32>, vector<20x64xf32>, vector<2x64xf32> -> vector<2x64xf32>
    %c0_67 = arith.constant 0 : index
    %c0_68 = arith.constant 0 : index
    %91 = vector.load %arg6[%c0_67, %c0_68] : memref<2x1xf32, #tpu.memory_space<vmem>>, vector<2x1xf32>
    %92 = vector.broadcast %91 : vector<2x1xf32> to vector<2x64xf32>
    %93 = arith.mulf %90, %92 : vector<2x64xf32>
    %c0_69 = arith.constant 0 : index
    %c0_70 = arith.constant 0 : index
    %94 = vector.load %arg25[%c0_69, %c0_70] : memref<1x64xf32, #tpu.memory_space<vmem>>, vector<1x64xf32>
    %cst_71 = arith.constant dense<0.000000e+00> : vector<1x2xf32>
    %95 = tpu.matmul %94, %93, %cst_71 {dimension_numbers = #tpu.dot_dimension_numbers<[1], [1], [0], [0], [0, 0, 1, 0], [], []>} : vector<1x64xf32>, vector<2x64xf32>, vector<1x2xf32> -> vector<1x2xf32>
    %c0_72 = arith.constant 0 : index
    %c0_73 = arith.constant 0 : index
    %96 = vector.load %arg26[%c0_72, %c0_73] : memref<1x2xf32, #tpu.memory_space<vmem>>, vector<1x2xf32>
    tpu.vector_store %arg26[%c0_72, %c0_73], %95 {strides = array<i32>} : memref<1x2xf32, #tpu.memory_space<vmem>>, vector<1x2xf32>,
    return
  }
}

</mosaic_0001>

<bundles_post_ra>
// kernel: gnn_policy_forward.1
= control target key start
LH: loop header
LB: loop body
LE: loop exit
PB: predicated region body
PF: predicated region fallthrough
CT: control target
= control target key end

     0   :  { %s3067_s0 = inlined_call_operand.vmem [shape: f32[12,5], index: 0, kind: input, shape index: {}]   ;;  %s3068_s1 = inlined_call_operand.vmem [shape: f32[20,17], index: 1, kind: input, shape index: {}]   ;;  %s3069_s2 = inlined_call_operand.vmem [shape: f32[32,1], index: 2, kind: input, shape index: {}]   ;;  %s3070_s3 = inlined_call_operand.vmem [shape: s32[32,1], index: 3, kind: input, shape index: {}]   ;;  %s3071_s4 = inlined_call_operand.vmem [shape: s32[32,1], index: 4, kind: input, shape index: {}]   ;;  %s3072_s5 = inlined_call_operand.vmem [shape: s32[1,20], index: 5, kind: input, shape index: {}]   ;;  %s3073_s6 = inlined_call_operand.vmem [shape: f32[2,1], index: 6, kind: input, shape index: {}]   ;;  %s3074_s7 = inlined_call_operand.<no memory space> [shape: f32[1,1], index: 7, kind: input, shape index: {}]   ;;  %s3075_s8 = inlined_call_operand.<no memory space> [shape: f32[1,1], index: 8, kind: input, shape index: {}]   ;;  %s3076_s9 = inlined_call_operand.vmem [shape: f32[5,64], index: 9, kind: input, shape index: {}]   ;;  %s3077_s10 = inlined_call_operand.vmem [shape: f32[1,64], index: 10, kind: input, shape index: {}]   ;;  %s3078_s11 = inlined_call_operand.vmem [shape: f32[64,64], index: 11, kind: input, shape index: {}]   ;;  %s3079_s12 = inlined_call_operand.hbm [shape: f32[1,64], index: 12, kind: input, shape index: {}]   ;;  %s3080_s13 = inlined_call_operand.vmem [shape: f32[17,64], index: 13, kind: input, shape index: {}]   ;;  %s3081_s14 = inlined_call_operand.vmem [shape: f32[1,64], index: 14, kind: input, shape index: {}]   ;;  %s3082_s15 = inlined_call_operand.vmem [shape: f32[64,64], index: 15, kind: input, shape index: {}]   ;;  %s3083_s16 = inlined_call_operand.hbm [shape: f32[1,64], index: 16, kind: input, shape index: {}]   ;;  %s3084_s17 = inlined_call_operand.vmem [shape: f32[64,64], index: 17, kind: input, shape index: {}]   ;;  %s3085_s18 = inlined_call_operand.vmem [shape: f32[64,64], index: 18, kind: input, shape index: {}]   ;;  %s3086_s19 = inlined_call_operand.hbm [shape: f32[1,64], index: 19, kind: input, shape index: {}]   ;;  %s3087_s20 = inlined_call_operand.hbm [shape: f32[64,64], index: 20, kind: input, shape index: {}]   ;;  %s3088_s21 = inlined_call_operand.hbm [shape: f32[64,64], index: 21, kind: input, shape index: {}]   ;;  %s3089_s22 = inlined_call_operand.hbm [shape: f32[1,64], index: 22, kind: input, shape index: {}]   ;;  %s3090_s23 = inlined_call_operand.hbm [shape: f32[64,64], index: 23, kind: input, shape index: {}]   ;;  %s3091_s24 = inlined_call_operand.hbm [shape: f32[1,64], index: 24, kind: input, shape index: {}]   ;;  %s3092_s25 = inlined_call_operand.hbm [shape: f32[1,64], index: 25, kind: input, shape index: {}]   ;;  %s3093_s26 = inlined_call_operand.hbm [shape: f32[1,2], index: 26, kind: output, shape index: {}]  }
   0x1   :  { %3099 = sst [smem:[#allocation26_spill]] %s3067_s0 }
   0x2   :  { %3100 = sst [smem:[#allocation27_spill]] %s3068_s1 }
   0x3   :  { %3101 = sst [smem:[#allocation28_spill]] %s3069_s2 }
   0x4   :  { %3102 = sst [smem:[#allocation29_spill]] %s3070_s3 }
   0x5   :  { %3103 = sst [smem:[#allocation30_spill]] %s3071_s4 }
   0x6   :  { %3104 = sst [smem:[#allocation31_spill]] %s3072_s5 }
   0x7   :  { %3105 = sst [smem:[#allocation32_spill]] %s3073_s6 }
   0x8   :  { %3106 = sst [smem:[#allocation33_spill]] %s3074_s7 }
   0x9   :  { %3107 = sst [smem:[#allocation34_spill]] %s3075_s8 }
   0xa   :  { %3108 = sst [smem:[#allocation35_spill]] %s3076_s9 }
   0xb   :  { %3109 = sst [smem:[#allocation36_spill]] %s3077_s10 }
   0xc   :  { %33 = vsyncpa [#allocation5], 0 }
   0xd   :  { %34 = vsyncpa [#allocation8], 0 }
   0xe   :  { %35 = vsyncpa [#allocation11], 0 }
   0xf   :  { %36 = vsyncpa [#allocation14], 0 }
  0x10   :  { %37 = vsyncpa [#allocation17], 0 }
  0x11   :  { %38 = vsyncpa [#allocation6], 0  ;;  %s2489_s27 = smov [#allocation7]   ;;  %s2490_s7 = smov [#allocation10]  }
  0x12   :  { %s85_s3 = sshll.u32 %s2489_s27, 4  ;;  %s108_s28 = sshll.u32 %s2490_s7, 4  ;;  %s86_s3 = int_to_ptr.vmem [resolvable:$true] %s85_s3  ;;  %s109_s28 = int_to_ptr.vmem [resolvable:$true] %s108_s28 }
  0x13   :  { %s2285_s8 = scalar_lea.vmem %s86_s3, 16  ;;  %s2289_s4 = scalar_lea.vmem %s86_s3, 32 }
  0x14   :  { %p2286_p0 = scmp.ne.s32.totalorder %s86_s3, %s2285_s8  ;;  %p2290_p1 = scmp.lt.s32.totalorder %s86_s3, %s86_s3 }
  0x15   :  { %p2291_p2 = scmp.lt.s32.totalorder %s2289_s4, %s2285_s8 }
  0x17   :  { %p2292_p3 = por %p2291_p2, %p2290_p1 }
  0x19   :  { %p2293_p4 = pnand %p2292_p3, %p2286_p0 }
  0x1b   :  { %2296 = shalt.err (!%p2293_p4)
}
  0x1c   :  { %88 = dma.hbm_to_vmem [thread:$0]  %s3083_s16, 16, %s86_s3, [#allocation8]  }
  0x1d   :  { %s2305_s9 = scalar_lea.vmem %s109_s28, 1024  ;;  %p2310_p6 = scmp.lt.s32.totalorder %s109_s28, %s109_s28 }
  0x1e   :  { %p2306_p5 = scmp.ne.s32.totalorder %s109_s28, %s2305_s9  ;;  %p2311_p7 = scmp.lt.s32.totalorder %s2305_s9, %s2305_s9 }
  0x20   :  { %p2312_p8 = por %p2311_p7, %p2310_p6 }
  0x22   :  { %p2313_p9 = pnand %p2312_p8, %p2306_p5 }
  0x24   :  { %2316 = shalt.err (!%p2313_p9)
}
  0x25   :  { %s2491_s30 = smov 128   ;;  %s2492_s2 = smov 8  }
  0x26   :  { %114 = dma.hbm_to_vmem [thread:$0]  %s3087_s20, 1024, %s109_s28, [#allocation11], %s2491_s30, %s2491_s30, %s2492_s2  }
  0x27   :  { %s2493_s6 = smov [#allocation13]   ;;  %s2494_s27 = smov [#allocation16]  }
  0x28   :  { %s133_s1 = sshll.u32 %s2493_s6, 4  ;;  %s155_s16 = sshll.u32 %s2494_s27, 4  ;;  %s134_s1 = int_to_ptr.vmem [resolvable:$true] %s133_s1  ;;  %s156_s16 = int_to_ptr.vmem [resolvable:$true] %s155_s16 }
  0x29   :  { %s2325_s3 = scalar_lea.vmem %s134_s1, 16  ;;  %s2329_s7 = scalar_lea.vmem %s134_s1, 32 }
  0x2a   :  { %p2326_p10 = scmp.ne.s32.totalorder %s134_s1, %s2325_s3  ;;  %p2330_p11 = scmp.lt.s32.totalorder %s134_s1, %s134_s1 }
  0x2b   :  { %p2331_p12 = scmp.lt.s32.totalorder %s2329_s7, %s2325_s3 }
  0x2d   :  { %p2332_p13 = por %p2331_p12, %p2330_p11 }
  0x2f   :  { %p2333_p0 = pnand %p2332_p13, %p2326_p10 }
  0x31   :  { %2336 = shalt.err (!%p2333_p0)
}
  0x32   :  { %136 = dma.hbm_to_vmem [thread:$0]  %s3089_s22, 16, %s134_s1, [#allocation14]  }
  0x33   :  { %s2345_s29 = scalar_lea.vmem %s156_s16, 16  ;;  %s2349_s20 = scalar_lea.vmem %s156_s16, 32 }
  0x34   :  { %p2346_p1 = scmp.ne.s32.totalorder %s156_s16, %s2345_s29  ;;  %p2350_p2 = scmp.lt.s32.totalorder %s156_s16, %s156_s16 }
  0x35   :  { %p2351_p3 = scmp.lt.s32.totalorder %s2349_s20, %s2345_s29 }
  0x37   :  { %p2352_p4 = por %p2351_p3, %p2350_p2 }
  0x39   :  { %p2353_p5 = pnand %p2352_p4, %p2346_p1 }
  0x3b   :  { %2356 = shalt.err (!%p2353_p5)
}
  0x3c   :  { %158 = dma.hbm_to_vmem [thread:$0]  %s3091_s24, 16, %s156_s16, [#allocation17]  }
  0x3d   :  { %s2495_s9 = smov [#allocation4]   ;;  %s2496_s10 = smov [#allocation9]  }
  0x3e   :  { %s69_s5 = sshll.u32 %s2495_s9, 4  ;;  %s99_s6 = sshll.u32 %s2496_s10, 4  ;;  %s70_s5 = int_to_ptr.vmem [resolvable:$true] %s69_s5  ;;  %s100_s6 = int_to_ptr.vmem [resolvable:$true] %s99_s6 }
  0x3f   :  { %s2365_s27 = scalar_lea.vmem %s70_s5, 16  ;;  %s2369_s22 = scalar_lea.vmem %s70_s5, 32 }
  0x40   :  { %p2366_p6 = scmp.ne.s32.totalorder %s70_s5, %s2365_s27  ;;  %p2370_p7 = scmp.lt.s32.totalorder %s70_s5, %s70_s5 }
  0x41   :  { %p2371_p8 = scmp.lt.s32.totalorder %s2369_s22, %s2365_s27 }
  0x43   :  { %p2372_p9 = por %p2371_p8, %p2370_p7 }
  0x45   :  { %p2373_p10 = pnand %p2372_p9, %p2366_p6 }
  0x47   :  { %2376 = shalt.err (!%p2373_p10)
}
  0x48   :  { %72 = dma.hbm_to_vmem [thread:$0]  %s3079_s12, 16, %s70_s5, [#allocation5]  }
  0x49   :  { %s2385_s7 = scalar_lea.vmem %s100_s6, 16  ;;  %s2389_s24 = scalar_lea.vmem %s100_s6, 32 }
  0x4a   :  { %p2386_p11 = scmp.ne.s32.totalorder %s100_s6, %s2385_s7  ;;  %p2390_p12 = scmp.lt.s32.totalorder %s100_s6, %s100_s6 }
  0x4b   :  { %p2391_p13 = scmp.lt.s32.totalorder %s2389_s24, %s2385_s7 }
  0x4d   :  { %p2392_p0 = por %p2391_p13, %p2390_p12 }
  0x4f   :  { %p2393_p1 = pnand %p2392_p0, %p2386_p11 }
  0x51   :  { %2396 = shalt.err (!%p2393_p1)
}
  0x52   :  { %102 = dma.hbm_to_vmem [thread:$0]  %s3086_s19, 16, %s100_s6, [#allocation8]  }
  0x53   :  { %s2497_s4 = smov [#allocation12]   ;;  %s2498_s20 = smov [#allocation15]  }
  0x54   :  { %s120_s29 = sshll.u32 %s2497_s4, 4  ;;  %s142_s28 = sshll.u32 %s2498_s20, 4  ;;  %s121_s29 = int_to_ptr.vmem [resolvable:$true] %s120_s29  ;;  %s143_s28 = int_to_ptr.vmem [resolvable:$true] %s142_s28 }
  0x55   :  { %s2405_s0 = scalar_lea.vmem %s121_s29, 1024  ;;  %p2410_p3 = scmp.lt.s32.totalorder %s121_s29, %s121_s29 }
  0x56   :  { %p2406_p2 = scmp.ne.s32.totalorder %s121_s29, %s2405_s0  ;;  %p2411_p4 = scmp.lt.s32.totalorder %s2405_s0, %s2405_s0 }
  0x58   :  { %p2412_p5 = por %p2411_p4, %p2410_p3 }
  0x5a   :  { %p2413_p6 = pnand %p2412_p5, %p2406_p2 }
  0x5c   :  { %2416 = shalt.err (!%p2413_p6)
}
  0x5d   :  { %126 = dma.hbm_to_vmem [thread:$0]  %s3088_s21, 1024, %s121_s29, [#allocation11], %s2491_s30, %s2491_s30, %s2492_s2  }
  0x5e   :  { %s2425_s19 = scalar_lea.vmem %s143_s28, 1024  ;;  %p2430_p8 = scmp.lt.s32.totalorder %s143_s28, %s143_s28 }
  0x5f   :  { %p2426_p7 = scmp.ne.s32.totalorder %s143_s28, %s2425_s19  ;;  %p2431_p9 = scmp.lt.s32.totalorder %s2425_s19, %s2425_s19 }
  0x61   :  { %p2432_p10 = por %p2431_p9, %p2430_p8 }
  0x63   :  { %p2433_p11 = pnand %p2432_p10, %p2426_p7 }
  0x65   :  { %2436 = shalt.err (!%p2433_p11)
}
  0x66   :  { %148 = dma.hbm_to_vmem [thread:$0]  %s3090_s23, 1024, %s143_s28, [#allocation14], %s2491_s30, %s2491_s30, %s2492_s2  }
  0x67   :  { %s2499_s6 = smov [#allocation18]  }
  0x68   :  { %s165_s27 = sshll.u32 %s2499_s6, 4  ;;  %s166_s27 = int_to_ptr.vmem [resolvable:$true] %s165_s27 }
  0x69   :  { %s2445_s22 = scalar_lea.vmem %s166_s27, 16  ;;  %s2449_s21 = scalar_lea.vmem %s166_s27, 32 }
  0x6a   :  { %p2446_p12 = scmp.ne.s32.totalorder %s166_s27, %s2445_s22  ;;  %p2450_p13 = scmp.lt.s32.totalorder %s166_s27, %s166_s27 }
  0x6b   :  { %p2451_p0 = scmp.lt.s32.totalorder %s2449_s21, %s2445_s22 }
  0x6d   :  { %p2452_p1 = por %p2451_p0, %p2450_p13 }
  0x6f   :  { %p2453_p2 = pnand %p2452_p1, %p2446_p12 }
  0x71   :  { %2456 = shalt.err (!%p2453_p2)
}
  0x72   :  { %168 = dma.hbm_to_vmem [thread:$0]  %s3092_s25, 16, %s166_s27, [#allocation17]  }
  0x73   :  { %2477 = dma.done.wait [#allocation5], 16  }
  0x74   :  { %2478 = vsyncadd [#allocation5], 4294967280 }
  0x75   :  { %2479 = dma.done.wait [#allocation8], 32  }
  0x76   :  { %2480 = vsyncadd [#allocation8], 4294967264 }
  0x77   :  { %2481 = dma.done.wait [#allocation11], 2048  }
  0x78   :  { %2482 = vsyncadd [#allocation11], 4294965248 }
  0x79   :  { %2483 = dma.done.wait [#allocation14], 1040  }
  0x7a   :  { %2484 = vsyncadd [#allocation14], 4294966256 }
  0x7b   :  { %2485 = dma.done.wait [#allocation17], 32  }
  0x7c   :  { %2486 = vsyncadd [#allocation17], 4294967264  ;;  %v2500_v0 = vmov 0   ;;  %vm213_vm0 = vcmask 1044480   ;;  %vm206_vm1 = vcmask 39936   ;;  %s3110_s2 = sld [smem:[#allocation35_spill]]  ;;  %v630_v50 = vlaneseq }
  0x7d   :  { %2275 = vset.pattern.permute.xlu0 %v2500_v0  ;;  %2276 = vset.pattern.permute.xlu1 %v2500_v0  ;;  %s3111_s24 = sld [smem:[#allocation26_spill]]  ;;  %v398_v4 = vld [vmem:[%s3080_s13 + $0x10] sm:$0x1]  ;;  %vm416_vm2 = vcmask 1040384   ;;  %v2501_v5 = vmov 0.0   ;;  %v397_v6 = vld [vmem:[%s3080_s13 + $0x8] sm:$0xff] }
  0x7e   :  { %s3112_s9 = sld [smem:[#allocation30_spill]]  ;;  %vm2502_vm3 = vmmov 0   ;;  %v396_v9 = vld [vmem:[%s3080_s13] sm:$0xff]  ;;  %v301_v10 = vld [vmem:[%s3078_s11 + $0x38] sm:$0xff]  ;;  %vm406_vm4 = vcmask 138240   ;;  %v300_v14 = vld [vmem:[%s3078_s11 + $0x30] sm:$0xff] }
  0x7f   :  { %s3113_s3 = sld [smem:[#allocation27_spill]]  ;;  %2024 = vmatprep.subr.mxu1 %v301_v10  ;;  %v510_v15 = vld [vmem:[%s3082_s15 + $0x38] sm:$0xff]  ;;  %v299_v19 = vld [vmem:[%s3078_s11 + $0x28] sm:$0xff]  ;;  %v509_v20 = vld [vmem:[%s3082_s15 + $0x30] sm:$0xff]  ;;  %v631_v51 = vand.u32 127, %v630_v50  ;;  %vm309_vm13 = vcmask 523264  }
  0x80   :  { %2025 = vmatpush3.msra.mxu1 %v301_v10  ;;  %s3114_s28 = sld [smem:[#allocation29_spill]]  ;;  %v298_v24 = vld [vmem:[%s3078_s11 + $0x20] sm:$0xff]  ;;  %v297_v25 = vld [vmem:[%s3078_s11 + $0x18] sm:$0xff]  ;;  %v508_v26 = vld [vmem:[%s3082_s15 + $0x28] sm:$0xff]  ;;  %vm684_vm14 = vcmask 162816   ;;  %vm1113_vm15 = vcmask 97280  }
  0x81   :  { %2026 = vmatprep.subr.mxu1 %v300_v14  ;;  %s3115_s8 = sld [smem:[#allocation28_spill]]  ;;  %v296_v29 = vld [vmem:[%s3078_s11 + $0x10] sm:$0xff]  ;;  %v507_v30 = vld [vmem:[%s3082_s15 + $0x20] sm:$0xff]  ;;  %v295_v33 = vld [vmem:[%s3078_s11 + $0x8] sm:$0xff]  ;;  %s2503_s21 = smov [#allocation19]  }
  0x82   :  { %v198_v1 = vld [vmem:[%s3110_s2] sm:$0x1f]  ;;  %2027 = vmatpush3.msra.mxu1 %v300_v14  ;;  %s3116_s20 = sld [smem:[#allocation33_spill]]  ;;  %v506_v34 = vld [vmem:[%s3082_s15 + $0x18] sm:$0xff]  ;;  %v505_v38 = vld [vmem:[%s3082_s15 + $0x10] sm:$0xff]  ;;  %s1830_s1 = sshll.u32 %s2503_s21, 4  ;;  %s1831_s1 = int_to_ptr.vmem [resolvable:$true] %s1830_s1 }
  0x83   :  { %v196_v2 = vld [vmem:[%s3111_s24] sm:$0xff]  ;;  %v197_v3 = vld [vmem:[%s3111_s24 + $0x8] sm:$0xf]  ;;  %2019 = vmatprep.subr.msk.mxu0 %vm213_vm0, %v198_v1  ;;  %2028 = vmatprep.subr.mxu1 %v299_v19  ;;  %s3117_s10 = sld [smem:[#allocation34_spill]]  ;;  %v2817_v47 = vld [vmem:[%s3085_s18 + $0x38] sm:$0xff]  ;;  %s2457_s23 = scalar_lea.vmem %s1831_s1, 16 }
  0x84   :  { %2021 = vmatprep.mubr.msk.f32.mxu0 %vm206_vm1, %v196_v2  ;;  %2020 = vmatpush3.msk.msra.mxu0 %vm213_vm0, %v198_v1  ;;  %v626_v7 = vld [vmem:[%s3112_s9] sm:$0xff]  ;;  %v628_v8 = vld [vmem:[%s3112_s9 + $0x10] sm:$0xff]  ;;  %v627_v12 = vld [vmem:[%s3112_s9 + $0x8] sm:$0xff]  ;;  %s3118_s12 = sld [smem:[#allocation32_spill]]  ;;  %vm697_vm0 = vcmask 1043456   ;;  %p2458_p3 = scmp.ne.s32.totalorder %s1831_s1, %s2457_s23 }
  0x85   :  { %2022 = vmatmul.mubr.msk.f32.vlgmr.msra.gmra.mxu0 %vm206_vm1, %v197_v3  ;;  %2043 = vmatprep.subr.mxu0 %v2501_v5  ;;  %v393_v11 = vld [vmem:[%s3113_s3] sm:$0xff]  ;;  %v629_v13 = vld [vmem:[%s3112_s9 + $0x18] sm:$0xff]  ;;  %v394_v16 = vld [vmem:[%s3113_s3 + $0x8] sm:$0xff]  ;;  %s3119_s5 = sld [smem:[#allocation36_spill]]  ;;  %vm842_vm1 = vcmask 261120   ;;  %s2461_s30 = scalar_lea.vmem %s1831_s1, 32 }
  0x86   :  { %2044 = vmatpush3.msk.msra.mxu0 %vm416_vm2, %v398_v4  ;;  %2049 = vmatprep.mubr.msk.f32.mxu0 %vm2502_vm3, %v2501_v5  ;;  %v656_v17 = vld [vmem:[%s3114_s28] sm:$0xff]  ;;  %v657_v18 = vld [vmem:[%s3114_s28 + $0x8] sm:$0xff]  ;;  %v395_v21 = vld [vmem:[%s3113_s3 + $0x10] sm:$0xf]  ;;  %p2462_p4 = scmp.lt.s32.totalorder %s1831_s1, %s1831_s1  ;;  %p2463_p5 = scmp.lt.s32.totalorder %s2461_s30, %s2457_s23 }
  0x87   :  { %2045 = vmatprep.subr.mxu0 %v2501_v5  ;;  %633 = vperm.xlu0 %2275, %v626_v7   ;;  %v658_v22 = vld [vmem:[%s3114_s28 + $0x10] sm:$0xff]  ;;  %v659_v23 = vld [vmem:[%s3114_s28 + $0x18] sm:$0xff]  ;;  %v611_v36 = vld [vmem:[%s3115_s8 + $0x8] sm:$0xff] }
  0x88   :  { %2046 = vmatpush3.msra.mxu0 %v397_v6  ;;  %639 = vperm.xlu1 %2276, %v628_v8   ;;  %v613_v27 = vld [vmem:[%s3115_s8 + $0x18] sm:$0xff]  ;;  %v615_v28 = vstv %s3116_s20  ;;  %v294_v37 = vld [vmem:[%s3078_s11] sm:$0xff]  ;;  %v504_v40 = vld [vmem:[%s3082_s15 + $0x8] sm:$0xff]  ;;  %p2464_p6 = por %p2463_p5, %p2462_p4 }
  0x89   :  { %2047 = vmatprep.subr.mxu0 %v2501_v5  ;;  %2029 = vmatpush3.msra.mxu1 %v299_v19  ;;  %v619_v31 = vmul.f32 %v615_v28, %v613_v27  ;;  %v621_v32 = vstv %s3117_s10  ;;  %v617_v39 = vmul.f32 %v615_v28, %v611_v36  ;;  %v503_v42 = vld [vmem:[%s3082_s15] sm:$0xff]  ;;  %v612_v43 = vld [vmem:[%s3115_s8 + $0x10] sm:$0xff] }
  0x8a   :  { %2048 = vmatpush3.msra.mxu0 %v396_v9  ;;  %2030 = vmatprep.subr.mxu1 %v298_v24  ;;  %v610_v44 = vld [vmem:[%s3115_s8] sm:$0xff]  ;;  %v618_v45 = vmul.f32 %v615_v28, %v612_v43  ;;  %v938_v19 = vld [vmem:[%s3085_s18 + $0x30] sm:$0xff]  ;;  %p2465_p7 = pnand %p2464_p6, %p2458_p3 }
  0x8b   :  { %2050 = vmatmul.mubr.msk.f32.vlgmr.msra.gmra.mxu0 %vm406_vm4, %v393_v11  ;;  %636 = vperm.xlu0 %2275, %v627_v12   ;;  %v625_v35 = vadd.f32 %v621_v32, %v619_v31  ;;  %v623_v41 = vadd.f32 %v621_v32, %v617_v39  ;;  %v616_v46 = vmul.f32 %v615_v28, %v610_v44  ;;  %v1738_v4 = vld [vmem:[%s3118_s12] sm:$0x3]  ;;  %v933_v31 = vld [vmem:[%s3085_s18 + $0x8] sm:$0xff]  ;;  %v1855_v44 = vld [vmem:[#allocation7] ss:$0 sm:$0xff] }
  0x8c   :  { %2052 = vmatprep.mubr.msk.f32.mxu0 %vm2502_vm3, %v2501_v5  ;;  %642 = vperm.xlu1 %2276, %v629_v13   ;;  %v624_v48 = vadd.f32 %v621_v32, %v618_v45  ;;  %v1843_v6 = vld [vmem:[%s3119_s5] ss:$0 sm:$0xff] }
  0x8d   :  { %2058 = vmatprep.subr.mxu0 %v2501_v5  ;;  %2031 = vmatpush3.msra.mxu1 %v298_v24  ;;  %v622_v49 = vadd.f32 %v621_v32, %v616_v46  ;;  %v1850_v11 = vld [vmem:[%s3081_s14] ss:$0 sm:$0xff]  ;;  %s3120_s14 = sld [smem:[#allocation31_spill]] }
  0x8e   :  { %2059 = vmatpush3.msra.mxu0 %v510_v15  ;;  %2032 = vmatprep.subr.mxu1 %v297_v25  ;;  %v932_v32 = vld [vmem:[%s3085_s18] sm:$0xff] }
  0x8f   :  { %2053 = vmatmul.mubr.msk.f32.gmra.mxu0 %vm406_vm4, %v394_v16  ;;  %661 = vperm.xlu0 %2275, %v656_v17  }
  0x90   :  { %2055 = vmatprep.mubr.msk.f32.mxu0 %vm2502_vm3, %v2501_v5  ;;  %664 = vperm.xlu1 %2276, %v657_v18  }
  0x91   :  { %2060 = vmatprep.subr.mxu0 %v2501_v5  ;;  %2033 = vmatpush3.msra.mxu1 %v297_v25  ;;  %v936_v25 = vld [vmem:[%s3085_s18 + $0x20] sm:$0xff] }
  0x92   :  { %2061 = vmatpush3.msra.mxu0 %v509_v20  ;;  %2034 = vmatprep.subr.mxu1 %v296_v29 }
  0x93   :  { %2056 = vmatmul.mubr.msk.f32.gmra.mxu0 %vm406_vm4, %v395_v21  ;;  %667 = vperm.xlu0 %2275, %v658_v22   ;;  %v937_v22 = vld [vmem:[%s3085_s18 + $0x28] sm:$0xff]  ;;  %vm1822_vm4 = vcmask 8192  }
  0x94   :  { %670 = vperm.xlu1 %2276, %v659_v23   ;;  %2062 = vmatprep.subr.mxu0 %v2501_v5 }
  0x95   :  { %2074 = vmatprep.mubr.msk.f32.mxu0 %vm2502_vm3, %v2501_v5  ;;  %2063 = vmatpush3.msra.mxu0 %v508_v26 }
  0x96   :  { %2064 = vmatprep.subr.mxu0 %v2501_v5  ;;  %2035 = vmatpush3.msra.mxu1 %v296_v29  ;;  %v935_v29 = vld [vmem:[%s3085_s18 + $0x18] sm:$0xff] }
  0x97   :  { %2065 = vmatpush3.msra.mxu0 %v507_v30  ;;  %2036 = vmatprep.subr.mxu1 %v295_v33  ;;  %v934_v30 = vld [vmem:[%s3085_s18 + $0x10] sm:$0xff] }
  0x98   :  { %2066 = vmatprep.subr.mxu0 %v2501_v5  ;;  %803 = vperm.xlu0 %2275, %v625_v35  }
  0x99   :  { %2067 = vmatpush3.msra.mxu0 %v506_v34  ;;  %2037 = vmatpush3.msra.mxu1 %v295_v33  ;;  %v1847_v33 = vld [vmem:[#allocation4] ss:$0 sm:$0xff] }
  0x9a   :  { %2068 = vmatprep.subr.mxu0 %v2501_v5  ;;  %2038 = vmatprep.subr.mxu1 %v294_v37 }
  0x9b   :  { %2069 = vmatpush3.msra.mxu0 %v505_v38  ;;  %2039 = vmatpush3.msra.mxu1 %v294_v37 }
  0x9c   :  { %2070 = vmatprep.subr.mxu0 %v2501_v5  ;;  %793 = vperm.xlu0 %2275, %v623_v41  }
  0x9d   :  { %2071 = vmatpush3.msra.mxu0 %v504_v40  ;;  %798 = vperm.xlu1 %2276, %v624_v48  }
  0x9e   :  { %2072 = vmatprep.subr.mxu0 %v2501_v5 }
  0x9f   :  { %2073 = vmatpush3.msra.mxu0 %v503_v42 }
  0xa0   :  { %2106 = vmatprep.subr.mxu0 %v2817_v47 }
  0xa1   :  { %788 = vperm.xlu1 %2276, %v622_v49  }
 0x102   :  { %v634_v52 = vpop.permute.xlu0 %633 }
 0x103   :  { %v640_v53 = vpop.permute.xlu1 %639  ;;  %vm644_vm5 = vcmp.eq.s32.totalorder %v634_v52, %v631_v51 }
 0x104   :  { %v2822_v55 = vsel %vm644_vm5, 1.0, %v2501_v5  ;;  %vm646_vm8 = vcmp.eq.s32.totalorder %v640_v53, %v631_v51 }
 0x105   :  { %1218 = vxpose.xlu1.b32.start [1/4] (short) (narrow) %v2822_v55, 24  ;;  %v2837_v63 = vsel %vm646_vm8, 1.0, %v2501_v5 }
 0x106   :  { %v637_v54 = vpop.permute.xlu0 %636 }
 0x107   :  { %v643_v56 = vpop.permute.xlu1 %642  ;;  %vm645_vm6 = vcmp.eq.s32.totalorder %v637_v54, %v631_v51 }
 0x108   :  { %v2826_v58 = vsel %vm645_vm6, 1.0, %v2501_v5  ;;  %vm647_vm11 = vcmp.eq.s32.totalorder %v643_v56, %v631_v51 }
 0x109   :  { %1219 = vxpose.xlu1.b32.cont [2/4] (short) (narrow) %v2826_v58, 24  ;;  %v2845_v2 = vsel %vm647_vm11, 1.0, %v2501_v5 }
 0x10a   :  { %v662_v57 = vpop.permute.xlu0 %661 }
 0x10b   :  { %vm672_vm7 = vcmp.eq.s32.totalorder %v662_v57, %v631_v51  ;;  %v665_v59 = vpop.permute.xlu1 %664 }
 0x10c   :  { %v2829_v60 = vsel %vm672_vm7, 1.0, %v2501_v5  ;;  %vm673_vm9 = vcmp.eq.s32.totalorder %v665_v59, %v631_v51 }
 0x10d   :  { %810 = vxpose.xlu0.b32.start [1/4] (short) (narrow) %v2829_v60, 16  ;;  %v2833_v61 = vsel %vm673_vm9, 1.0, %v2501_v5  ;;  %1220 = vxpose.xlu1.b32.cont [3/4] (short) (narrow) %v2837_v63, 24 }
 0x10e   :  { %v668_v62 = vpop.permute.xlu0 %667 }
 0x10f   :  { %vm674_vm10 = vcmp.eq.s32.totalorder %v668_v62, %v631_v51  ;;  %v671_v0 = vpop.permute.xlu1 %670 }
 0x110   :  { %v2841_v1 = vsel %vm674_vm10, 1.0, %v2501_v5  ;;  %vm675_vm12 = vcmp.eq.s32.totalorder %v671_v0, %v631_v51 }
 0x111   :  { %811 = vxpose.xlu0.b32.cont [2/4] (short) (narrow) %v2833_v61, 16  ;;  %v2849_v3 = vsel %vm675_vm12, 1.0, %v2501_v5  ;;  %1221 = vxpose.xlu1.b32.end [4/4] (short) (narrow) %v2845_v2, 24 }
 0x113   :  { %v2919_v54 = vpop.permute.xlu0 %803 }
 0x115   :  { %812 = vxpose.xlu0.b32.cont [3/4] (short) (narrow) %v2841_v1, 16 }
 0x119   :  { %813 = vxpose.xlu0.b32.end [4/4] (short) (narrow) %v2849_v3, 16 }
 0x142   :  { %1741 = vperm.xlu0 %2275, %v1738_v4  }
 0x145   :  { %v2023_v7 = vpop.f32.mrf.mxu0 }
 0x146   :  { %v289_v8 = vadd.f32 %v2023_v7, %v1843_v6  ;;  %v931_v7 = vld [vmem:[%s3084_s17 + $0x38] sm:$0xff] }
 0x147   :  { %v283_v9 = vpop.f32.mrf.mxu0 }
 0x148   :  { %v284_v10 = vadd.f32 %v1843_v6, %v283_v9  ;;  %v293_v13 = vmax.f32 %v289_v8, 0.0  ;;  %v930_v9 = vld [vmem:[%s3084_s17 + $0x30] sm:$0xff] }
 0x14a   :  { %v292_v12 = vmax.f32 %v284_v10, 0.0  ;;  %v929_v10 = vld [vmem:[%s3084_s17 + $0x28] sm:$0xff] }
 0x14b   :  { %v486_v14 = vpop.f32.mrf.mxu0 }
 0x14c   :  { %v487_v15 = vadd.f32 %v1850_v11, %v486_v14  ;;  %2040 = vmatprep.mubr.msk.f32.mxu1 %vm309_vm13, %v292_v12  ;;  %v927_v12 = vld [vmem:[%s3084_s17 + $0x18] sm:$0xff]  ;;  %v925_v14 = vld [vmem:[%s3084_s17 + $0x8] sm:$0xff] }
 0x14d   :  { %2041 = vmatmul.mubr.msk.f32.vlgmr.msra.gmra.mxu1 %vm309_vm13, %v293_v13  ;;  %v2051_v16 = vpop.f32.mrf.mxu0  ;;  %v926_v13 = vld [vmem:[%s3084_s17 + $0x10] sm:$0xff] }
 0x14e   :  { %v500_v17 = vmax.f32 %v487_v15, 0.0  ;;  %2089 = vmatprep.mubr.msk.f32.mxu1 %vm684_vm14, %v2822_v55  ;;  %v2921_v55 = vpop.permute.xlu0 %793  ;;  %v924_v15 = vld [vmem:[%s3084_s17] sm:$0xff] }
 0x14f   :  { %v491_v18 = vpop.f32.mrf.mxu0 }
 0x150   :  { %v492_v20 = vadd.f32 %v1850_v11, %v491_v18  ;;  %2075 = vmatmul.mubr.msk.f32.vlgmr.msra.gmra.mxu0 %vm309_vm13, %v500_v17  ;;  %v1354_v18 = vld [vmem:[#allocation12 + $0x38] sm:$0xff] }
 0x151   :  { %v2054_v21 = vpop.f32.mrf.mxu0  ;;  %2077 = vmatprep.mubr.msk.f32.mxu0 %vm2502_vm3, %v2501_v5  ;;  %2107 = vmatpush3.msra.mxu0 %v2817_v47 }
 0x152   :  { %v501_v23 = vmax.f32 %v492_v20, 0.0  ;;  %2108 = vmatprep.subr.mxu0 %v938_v19  ;;  %v1352_v20 = vld [vmem:[#allocation12 + $0x28] sm:$0xff]  ;;  %v1351_v21 = vld [vmem:[#allocation12 + $0x20] sm:$0xff] }
 0x153   :  { %v496_v24 = vpop.f32.mrf.mxu0  ;;  %2109 = vmatpush3.msra.mxu0 %v938_v19  ;;  %v1353_v19 = vld [vmem:[#allocation12 + $0x30] sm:$0xff] }
 0x154   :  { %v497_v26 = vadd.f32 %v1850_v11, %v496_v24  ;;  %2078 = vmatmul.mubr.msk.f32.gmra.mxu0 %vm309_vm13, %v501_v23  ;;  %2110 = vmatprep.subr.mxu0 %v937_v22  ;;  %v928_v11 = vld [vmem:[%s3084_s17 + $0x20] sm:$0xff]  ;;  %v1349_v23 = vld [vmem:[#allocation12 + $0x10] sm:$0xff]  ;;  %v1348_v24 = vld [vmem:[#allocation12 + $0x8] sm:$0xff] }
 0x155   :  { %v2057_v27 = vpop.f32.mrf.mxu0  ;;  %2080 = vmatprep.mubr.msk.f32.mxu0 %vm2502_vm3, %v2501_v5  ;;  %2111 = vmatpush3.msra.mxu0 %v937_v22  ;;  %v1350_v22 = vld [vmem:[#allocation12 + $0x18] sm:$0xff] }
 0x156   :  { %v502_v28 = vmax.f32 %v497_v26, 0.0  ;;  %2112 = vmatprep.subr.mxu0 %v936_v25 }
 0x157   :  { %2113 = vmatpush3.msra.mxu0 %v936_v25  ;;  %v1347_v25 = vld [vmem:[#allocation12] sm:$0xff] }
 0x158   :  { %2081 = vmatmul.mubr.msk.f32.gmra.mxu0 %vm309_vm13, %v502_v28  ;;  %2114 = vmatprep.subr.mxu0 %v935_v29  ;;  %v1878_v28 = vld [vmem:[#allocation9] ss:$0 sm:$0xff] }
 0x159   :  { %2115 = vmatpush3.msra.mxu0 %v935_v29 }
 0x15a   :  { %2116 = vmatprep.subr.mxu0 %v934_v30 }
 0x15b   :  { %2117 = vmatpush3.msra.mxu0 %v934_v30 }
 0x15c   :  { %2118 = vmatprep.subr.mxu0 %v933_v31 }
 0x15d   :  { %2119 = vmatpush3.msra.mxu0 %v933_v31 }
 0x15e   :  { %2120 = vmatprep.subr.mxu0 %v932_v32 }
 0x15f   :  { %2121 = vmatpush3.msra.mxu0 %v932_v32 }
 0x189   :  { %v826_v56 = vpop.trf.xlu0 }
 0x18d   :  { %v827_v8 = vpop.trf.xlu0 }
 0x20d   :  { %v2042_v34 = vpop.f32.mrf.mxu1 }
 0x20e   :  { %v388_v35 = vadd.f32 %v2042_v34, %v1847_v33 }
 0x20f   :  { %v382_v36 = vpop.f32.mrf.mxu1 }
 0x210   :  { %v383_v37 = vadd.f32 %v1847_v33, %v382_v36  ;;  %v593_v38 = vpop.f32.mrf.mxu0  ;;  %v392_v41 = vmax.f32 %v388_v35, 0.0 }
 0x211   :  { %v594_v49 = vadd.f32 %v1855_v44, %v593_v38 }
 0x212   :  { %v391_v39 = vmax.f32 %v383_v37, 0.0  ;;  %v2076_v40 = vpop.f32.mrf.mxu0 }
 0x213   :  { %v2907_v53 = vmax.f32 %v594_v49, 0.0  ;;  %v1346_v49 = vld [vmem:[#allocation10 + $0x38] sm:$0xff] }
 0x214   :  { %v598_v42 = vpop.f32.mrf.mxu0  ;;  %2122 = vmatprep.mubr.msk.f32.mxu0 %vm309_vm13, %v391_v39 }
 0x215   :  { %2123 = vmatmul.mubr.msk.f32.vlgmr.msra.gmra.mxu0 %vm309_vm13, %v392_v41  ;;  %v599_v46 = vadd.f32 %v1855_v44, %v598_v42 }
 0x216   :  { %v2079_v43 = vpop.f32.mrf.mxu0  ;;  %2148 = vmatprep.mubr.msk.f32.mxu0 %vm1113_vm15, %v2829_v60  ;;  %v2924_v60 = vpop.permute.xlu1 %798 }
 0x217   :  { %v2901_v52 = vmax.f32 %v599_v46, 0.0 }
 0x218   :  { %v603_v45 = vpop.f32.mrf.mxu0 }
 0x219   :  { %v604_v47 = vadd.f32 %v1855_v44, %v603_v45 }
 0x21a   :  { %v2082_v48 = vpop.f32.mrf.mxu0  ;;  %v2929_v4 = vpop.permute.xlu1 %788 }
 0x21b   :  { %v2899_v51 = vmax.f32 %v604_v47, 0.0 }
 0x21d   :  { %2083 = vmatprep.subr.msk.mxu1 %vm697_vm0, %v2899_v51 }
 0x21e   :  { %2084 = vmatpush3.msk.msra.mxu1 %vm697_vm0, %v2899_v51  ;;  %v1234_v46 = vpop.trf.xlu1 }
 0x21f   :  { %2085 = vmatprep.subr.mxu1 %v2901_v52 }
 0x220   :  { %2086 = vmatpush3.msra.mxu1 %v2901_v52 }
 0x221   :  { %2087 = vmatprep.subr.mxu1 %v2907_v53 }
 0x222   :  { %2088 = vmatpush3.msra.mxu1 %v2907_v53 }
 0x223   :  { %2090 = vmatmul.mubr.msk.f32.vlgmr.msra.gmra.mxu1 %vm684_vm14, %v2826_v58 }
 0x224   :  { %2092 = vmatprep.mubr.msk.f32.mxu1 %vm684_vm14, %v2837_v63 }
 0x227   :  { %2093 = vmatmul.mubr.msk.f32.gmra.mxu1 %vm684_vm14, %v2845_v2 }
 0x228   :  { %2103 = vmatprep.mubr.msk.f32.mxu1 %vm842_vm1, %v826_v56  ;;  %v1342_v56 = vld [vmem:[#allocation10 + $0x18] sm:$0xff] }
 0x2d5   :  { %v2124_v26 = vpop.f32.mrf.mxu0 }
 0x2d7   :  { %v1012_v30 = vpop.f32.mrf.mxu0 }
 0x2e3   :  { %v2091_v57 = vpop.f32.mrf.mxu1 }
 0x2e4   :  { %v807_v2 = vmul.f32 %v2091_v57, %v2921_v55  ;;  %v1341_v57 = vld [vmem:[#allocation10 + $0x10] sm:$0xff] }
 0x2e5   :  { %v767_v59 = vpop.f32.mrf.mxu1 }
 0x2e6   :  { %v806_v6 = vmul.f32 %v2929_v4, %v767_v59  ;;  %v1340_v59 = vld [vmem:[#allocation10 + $0x8] sm:$0xff] }
 0x2e7   :  { %v2094_v62 = vpop.f32.mrf.mxu1 }
 0x2e8   :  { %v809_v58 = vmul.f32 %v2094_v62, %v2919_v54  ;;  %v1552_v62 = vld [vmem:[#allocation15 + $0x38] sm:$0xff] }
 0x2e9   :  { %v777_v0 = vpop.f32.mrf.mxu1 }
 0x2ea   :  { %v808_v63 = vmul.f32 %v2924_v60, %v777_v0  ;;  %2095 = vmatprep.subr.mxu1 %v809_v58  ;;  %v1550_v0 = vld [vmem:[#allocation15 + $0x28] sm:$0xff] }
 0x2eb   :  { %2096 = vmatpush3.msra.mxu1 %v809_v58  ;;  %v1551_v58 = vld [vmem:[#allocation15 + $0x30] sm:$0xff] }
 0x2ec   :  { %2097 = vmatprep.subr.mxu1 %v808_v63 }
 0x2ed   :  { %2098 = vmatpush3.msra.mxu1 %v808_v63  ;;  %v1549_v63 = vld [vmem:[#allocation15 + $0x20] sm:$0xff] }
 0x2ee   :  { %2099 = vmatprep.subr.mxu1 %v807_v2 }
 0x2ef   :  { %2100 = vmatpush3.msra.mxu1 %v807_v2 }
 0x2f0   :  { %2101 = vmatprep.subr.mxu1 %v806_v6 }
 0x2f1   :  { %2102 = vmatpush3.msra.mxu1 %v806_v6 }
 0x2f2   :  { %2104 = vmatmul.mubr.msk.f32.vlgmr.msra.gmra.mxu1 %vm842_vm1, %v827_v8  ;;  %2125 = vmatprep.subr.mxu1 %v931_v7 }
 0x2f3   :  { %2126 = vmatpush3.msra.mxu1 %v931_v7 }
 0x2f4   :  { %2127 = vmatprep.subr.mxu1 %v930_v9 }
 0x2f5   :  { %2128 = vmatpush3.msra.mxu1 %v930_v9 }
 0x2f6   :  { %2129 = vmatprep.subr.mxu1 %v929_v10 }
 0x2f7   :  { %2130 = vmatpush3.msra.mxu1 %v929_v10  ;;  %v1548_v10 = vld [vmem:[#allocation15 + $0x18] sm:$0xff] }
 0x2f8   :  { %2131 = vmatprep.subr.mxu1 %v928_v11 }
 0x2f9   :  { %2132 = vmatpush3.msra.mxu1 %v928_v11  ;;  %v1547_v11 = vld [vmem:[#allocation15 + $0x10] sm:$0xff] }
 0x2fa   :  { %2133 = vmatprep.subr.mxu1 %v927_v12 }
 0x2fb   :  { %2134 = vmatpush3.msra.mxu1 %v927_v12  ;;  %v1546_v12 = vld [vmem:[#allocation15 + $0x8] sm:$0xff] }
 0x2fc   :  { %2135 = vmatprep.subr.mxu1 %v926_v13 }
 0x2fd   :  { %2136 = vmatpush3.msra.mxu1 %v926_v13  ;;  %v1545_v13 = vld [vmem:[#allocation15] sm:$0xff] }
 0x2fe   :  { %2137 = vmatprep.subr.mxu1 %v925_v14 }
 0x2ff   :  { %2138 = vmatpush3.msra.mxu1 %v925_v14 }
 0x300   :  { %2139 = vmatprep.subr.mxu1 %v924_v15 }
 0x301   :  { %2140 = vmatpush3.msra.mxu1 %v924_v15  ;;  %v1893_v15 = vld [vmem:[#allocation13] ss:$0 sm:$0xff] }
 0x302   :  { %2171 = vmatprep.subr.mxu1 %v2501_v5 }
 0x3b2   :  { %v2105_v16 = vpop.f32.mrf.mxu1 }
 0x3b4   :  { %v915_v17 = vpop.f32.mrf.mxu1 }
 0x3b5   :  { %2141 = vmatprep.mubr.msk.f32.mxu1 %vm309_vm13, %v915_v17 }
 0x3b6   :  { %2142 = vmatmul.mubr.msk.f32.vlgmr.msra.gmra.mxu1 %vm309_vm13, %v2105_v16 }
 0x3b7   :  { %2172 = vmatpush3.msra.mxu1 %v1354_v18  ;;  %2187 = vmatprep.mubr.msk.f32.mxu1 %vm2502_vm3, %v2501_v5 }
 0x3b8   :  { %2173 = vmatprep.subr.mxu1 %v2501_v5 }
 0x3b9   :  { %2174 = vmatpush3.msra.mxu1 %v1353_v19 }
 0x3ba   :  { %2175 = vmatprep.subr.mxu1 %v2501_v5 }
 0x3bb   :  { %2176 = vmatpush3.msra.mxu1 %v1352_v20 }
 0x3bc   :  { %2177 = vmatprep.subr.mxu1 %v2501_v5 }
 0x3bd   :  { %2178 = vmatpush3.msra.mxu1 %v1351_v21 }
 0x3be   :  { %2179 = vmatprep.subr.mxu1 %v2501_v5 }
 0x3bf   :  { %2180 = vmatpush3.msra.mxu1 %v1350_v22 }
 0x3c0   :  { %2181 = vmatprep.subr.mxu1 %v2501_v5 }
 0x3c1   :  { %2182 = vmatpush3.msra.mxu1 %v1349_v23 }
 0x3c2   :  { %2183 = vmatprep.subr.mxu1 %v2501_v5 }
 0x3c3   :  { %2184 = vmatpush3.msra.mxu1 %v1348_v24 }
 0x3c4   :  { %2185 = vmatprep.subr.mxu1 %v2501_v5 }
 0x3c5   :  { %2186 = vmatpush3.msra.mxu1 %v1347_v25 }
 0x3c6   :  { %2188 = vmatmul.mubr.msk.f32.vlgmr.msra.gmra.mxu1 %vm309_vm13, %v2907_v53  ;;  %2221 = vmatprep.subr.mxu1 %v2501_v5  ;;  %v1344_v53 = vld [vmem:[#allocation10 + $0x28] sm:$0xff] }
 0x3c7   :  { %2190 = vmatprep.mubr.msk.f32.mxu1 %vm2502_vm3, %v2501_v5  ;;  %2222 = vmatpush3.msra.mxu1 %v1552_v62 }
 0x3c8   :  { %2223 = vmatprep.subr.mxu1 %v2501_v5 }
 0x3c9   :  { %2224 = vmatpush3.msra.mxu1 %v1551_v58 }
 0x3ca   :  { %2191 = vmatmul.mubr.msk.f32.gmra.mxu1 %vm309_vm13, %v2901_v52  ;;  %v1345_v52 = vld [vmem:[#allocation10 + $0x30] sm:$0xff]  ;;  %2225 = vmatprep.subr.mxu1 %v2501_v5 }
 0x3cb   :  { %2193 = vmatprep.mubr.msk.f32.mxu1 %vm2502_vm3, %v2501_v5  ;;  %2226 = vmatpush3.msra.mxu1 %v1550_v0 }
 0x3cc   :  { %2227 = vmatprep.subr.mxu1 %v2501_v5 }
 0x3cd   :  { %2228 = vmatpush3.msra.mxu1 %v1549_v63 }
 0x3ce   :  { %2194 = vmatmul.mubr.msk.f32.gmra.mxu1 %vm309_vm13, %v2899_v51  ;;  %v1235_v51 = vpop.trf.xlu1  ;;  %2229 = vmatprep.subr.mxu1 %v2501_v5 }
 0x3cf   :  { %2237 = vmatprep.mubr.msk.f32.mxu1 %vm2502_vm3, %v2501_v5  ;;  %2230 = vmatpush3.msra.mxu1 %v1548_v10 }
 0x3d0   :  { %2231 = vmatprep.subr.mxu1 %v2501_v5 }
 0x3d1   :  { %2232 = vmatpush3.msra.mxu1 %v1547_v11 }
 0x3d2   :  { %2233 = vmatprep.subr.mxu1 %v2501_v5 }
 0x3d3   :  { %2234 = vmatpush3.msra.mxu1 %v1546_v12 }
 0x3d4   :  { %2235 = vmatprep.subr.mxu1 %v2501_v5 }
 0x3d5   :  { %2236 = vmatpush3.msra.mxu1 %v1545_v13 }
 0x476   :  { %v2143_v27 = vpop.f32.mrf.mxu1 }
 0x477   :  { %v1099_v29 = vadd.f32 %v2143_v27, %v2124_v26 }
 0x478   :  { %v1093_v31 = vpop.f32.mrf.mxu1 }
 0x479   :  { %v1110_v32 = vadd.f32 %v1878_v28, %v1099_v29  ;;  %v1094_v33 = vadd.f32 %v1093_v31, %v1012_v30 }
 0x47b   :  { %v1112_v34 = vmax.f32 %v1110_v32, 0.0  ;;  %v1109_v35 = vadd.f32 %v1878_v28, %v1094_v33 }
 0x47d   :  { %v1111_v36 = vmax.f32 %v1109_v35, 0.0  ;;  %2144 = vmatprep.subr.msk.mxu0 %vm697_vm0, %v1112_v34 }
 0x47e   :  { %2145 = vmatpush3.msk.msra.mxu0 %vm697_vm0, %v1112_v34  ;;  %v1894_v34 = vld [vmem:[#allocation16] ss:$0 sm:$0xff] }
 0x47f   :  { %2146 = vmatprep.subr.mxu0 %v1111_v36 }
 0x480   :  { %2147 = vmatpush3.msra.mxu0 %v1111_v36  ;;  %v1654_v36 = vshrl.u32 %v630_v50, 7  ;;  %v1742_v50 = vpop.permute.xlu0 %1741 }
 0x481   :  { %2149 = vmatmul.mubr.msk.f32.vlgmr.msra.gmra.mxu0 %vm1113_vm15, %v2833_v61  ;;  %2154 = vmatprep.subr.mxu0 %v2501_v5 }
 0x482   :  { %2151 = vmatprep.mubr.msk.f32.mxu0 %vm1113_vm15, %v2841_v1 }
 0x485   :  { %2152 = vmatmul.mubr.msk.f32.gmra.mxu0 %vm1113_vm15, %v2849_v3 }
 0x486   :  { %v2991_v37 = vpop.f32.mrf.mxu1  ;;  %2162 = vmatprep.mubr.msk.f32.mxu0 %vm2502_vm3, %v2501_v5 }
 0x488   :  { %v2189_v38 = vpop.f32.mrf.mxu1 }
 0x48a   :  { %v2995_v39 = vpop.f32.mrf.mxu1 }
 0x48c   :  { %v2192_v40 = vpop.f32.mrf.mxu1 }
 0x48e   :  { %v2997_v41 = vpop.f32.mrf.mxu1 }
 0x490   :  { %v2195_v61 = vpop.f32.mrf.mxu1 }
 0x541   :  { %v2150_v42 = vpop.f32.mrf.mxu0 }
 0x542   :  { %v1215_v47 = vmul.f32 %v2150_v42, %v2921_v55  ;;  %v1236_v55 = vpop.trf.xlu1 }
 0x543   :  { %v1195_v43 = vpop.f32.mrf.mxu0 }
 0x544   :  { %v1214_v48 = vmul.f32 %v1195_v43, %v2929_v4 }
 0x545   :  { %v2153_v44 = vpop.f32.mrf.mxu0 }
 0x546   :  { %v1217_v1 = vmul.f32 %v2153_v44, %v2919_v54  ;;  %v1343_v54 = vld [vmem:[#allocation10 + $0x20] sm:$0xff] }
 0x547   :  { %v1205_v45 = vpop.f32.mrf.mxu0 }
 0x548   :  { %v1216_v3 = vmul.f32 %v1205_v45, %v2924_v60  ;;  %2155 = vmatpush3.msra.mxu0 %v1217_v1  ;;  %v1339_v60 = vld [vmem:[#allocation10] sm:$0xff] }
 0x549   :  { %2156 = vmatprep.subr.mxu0 %v2501_v5 }
 0x54a   :  { %2157 = vmatpush3.msra.mxu0 %v1216_v3 }
 0x54b   :  { %2158 = vmatprep.subr.mxu0 %v2501_v5 }
 0x54c   :  { %2159 = vmatpush3.msra.mxu0 %v1215_v47 }
 0x54d   :  { %2160 = vmatprep.subr.mxu0 %v2501_v5 }
 0x54e   :  { %2161 = vmatpush3.msra.mxu0 %v1214_v48 }
 0x54f   :  { %2163 = vmatmul.mubr.msk.f32.vlgmr.msra.gmra.mxu0 %vm842_vm1, %v1234_v46  ;;  %2196 = vmatprep.subr.mxu0 %v2501_v5  ;;  %v1745_v46 = vld [vmem:[#allocation18] sm:$0x1] }
 0x550   :  { %2165 = vmatprep.mubr.msk.f32.mxu0 %vm2502_vm3, %v2501_v5  ;;  %2197 = vmatpush3.msra.mxu0 %v1346_v49 }
 0x551   :  { %2198 = vmatprep.subr.mxu0 %v2501_v5 }
 0x552   :  { %2199 = vmatpush3.msra.mxu0 %v1345_v52 }
 0x553   :  { %2166 = vmatmul.mubr.msk.f32.gmra.mxu0 %vm842_vm1, %v1235_v51  ;;  %2200 = vmatprep.subr.mxu0 %v2501_v5 }
 0x554   :  { %2168 = vmatprep.mubr.msk.f32.mxu0 %vm2502_vm3, %v2501_v5  ;;  %2201 = vmatpush3.msra.mxu0 %v1344_v53 }
 0x555   :  { %2202 = vmatprep.subr.mxu0 %v2501_v5 }
 0x556   :  { %2203 = vmatpush3.msra.mxu0 %v1343_v54 }
 0x557   :  { %2169 = vmatmul.mubr.msk.f32.gmra.mxu0 %vm842_vm1, %v1236_v55  ;;  %2204 = vmatprep.subr.mxu0 %v2501_v5 }
 0x558   :  { %2205 = vmatpush3.msra.mxu0 %v1342_v56  ;;  %2212 = vmatprep.mubr.msk.f32.mxu0 %vm2502_vm3, %v2501_v5 }
 0x559   :  { %2206 = vmatprep.subr.mxu0 %v2501_v5 }
 0x55a   :  { %2207 = vmatpush3.msra.mxu0 %v1341_v57 }
 0x55b   :  { %2208 = vmatprep.subr.mxu0 %v2501_v5 }
 0x55c   :  { %2209 = vmatpush3.msra.mxu0 %v1340_v59 }
 0x55d   :  { %2210 = vmatprep.subr.mxu0 %v2501_v5 }
 0x55e   :  { %2211 = vmatpush3.msra.mxu0 %v1339_v60 }
 0x55f   :  { %2246 = vmatprep.subr.mxu0 %v2501_v5 }
 0x60f   :  { %v1325_v2 = vpop.f32.mrf.mxu0 }
 0x610   :  { %2213 = vmatmul.mubr.msk.f32.vlgmr.msra.gmra.mxu0 %vm309_vm13, %v1325_v2 }
 0x611   :  { %v2164_v4 = vpop.f32.mrf.mxu0  ;;  %2215 = vmatprep.mubr.msk.f32.mxu0 %vm2502_vm3, %v2501_v5 }
 0x613   :  { %v1330_v6 = vpop.f32.mrf.mxu0 }
 0x614   :  { %2216 = vmatmul.mubr.msk.f32.gmra.mxu0 %vm309_vm13, %v1330_v6 }
 0x615   :  { %v2167_v7 = vpop.f32.mrf.mxu0  ;;  %2218 = vmatprep.mubr.msk.f32.mxu0 %vm2502_vm3, %v2501_v5 }
 0x617   :  { %v1335_v8 = vpop.f32.mrf.mxu0 }
 0x618   :  { %2219 = vmatmul.mubr.msk.f32.gmra.mxu0 %vm309_vm13, %v1335_v8 }
 0x619   :  { %v2170_v9 = vpop.f32.mrf.mxu0  ;;  %2252 = vmatprep.mubr.msk.f32.mxu0 %vm2502_vm3, %v2501_v5 }
 0x6d0   :  { %v1518_v14 = vpop.f32.mrf.mxu0 }
 0x6d1   :  { %v1519_v16 = vadd.f32 %v1518_v14, %v2991_v37 }
 0x6d2   :  { %v2214_v17 = vpop.f32.mrf.mxu0 }
 0x6d3   :  { %v1539_v18 = vadd.f32 %v1893_v15, %v1519_v16 }
 0x6d4   :  { %v1523_v19 = vpop.f32.mrf.mxu0 }
 0x6d5   :  { %v1542_v20 = vmax.f32 %v1539_v18, 0.0  ;;  %v1524_v21 = vadd.f32 %v1523_v19, %v2995_v39  ;;  %v1898_v39 = vld [vmem:[%s3120_s14] ss:$0 sm:$0xff] }
 0x6d6   :  { %v2217_v22 = vpop.f32.mrf.mxu0  ;;  %vm1659_vm2 = vcmp.eq.s32.totalorder %v1898_v39, %v1654_v36 }
 0x6d7   :  { %v1540_v23 = vadd.f32 %v1893_v15, %v1524_v21  ;;  %2238 = vmatmul.mubr.msk.f32.vlgmr.msra.gmra.mxu1 %vm309_vm13, %v1542_v20  ;;  %v1899_v44 = vsel %vm1659_vm2, 1.0, %v2501_v5 }
 0x6d8   :  { %v1528_v24 = vpop.f32.mrf.mxu0  ;;  %2240 = vmatprep.mubr.msk.f32.mxu1 %vm2502_vm3, %v2501_v5 }
 0x6d9   :  { %v1543_v25 = vmax.f32 %v1540_v23, 0.0  ;;  %v1529_v26 = vadd.f32 %v1528_v24, %v2997_v41 }
 0x6da   :  { %v2220_v27 = vpop.f32.mrf.mxu0 }
 0x6db   :  { %v1541_v28 = vadd.f32 %v1893_v15, %v1529_v26  ;;  %2241 = vmatmul.mubr.msk.f32.gmra.mxu1 %vm309_vm13, %v1543_v25 }
 0x6dc   :  { %2243 = vmatprep.mubr.msk.f32.mxu1 %vm2502_vm3, %v2501_v5 }
 0x6dd   :  { %v1544_v29 = vmax.f32 %v1541_v28, 0.0 }
 0x6df   :  { %2244 = vmatmul.mubr.msk.f32.gmra.mxu1 %vm309_vm13, %v1544_v29 }
 0x797   :  { %v1635_v30 = vpop.f32.mrf.mxu1 }
 0x798   :  { %v1636_v41 = vadd.f32 %v1894_v34, %v1635_v30 }
 0x799   :  { %v2239_v31 = vpop.f32.mrf.mxu1 }
 0x79a   :  { %v1649_v43 = vmax.f32 %v1636_v41, 0.0 }
 0x79b   :  { %v1640_v32 = vpop.f32.mrf.mxu1 }
 0x79c   :  { %v1641_v37 = vadd.f32 %v1894_v34, %v1640_v32 }
 0x79d   :  { %v2242_v33 = vpop.f32.mrf.mxu1 }
 0x79e   :  { %v1650_v42 = vmax.f32 %v1641_v37, 0.0 }
 0x79f   :  { %v1645_v35 = vpop.f32.mrf.mxu1 }
 0x7a0   :  { %v1646_v38 = vadd.f32 %v1894_v34, %v1645_v35 }
 0x7a1   :  { %v2245_v40 = vpop.f32.mrf.mxu1 }
 0x7a2   :  { %v1651_v61 = vmax.f32 %v1646_v38, 0.0 }
 0x7a4   :  { %2247 = vmatpush3.msk.msra.mxu0 %vm697_vm0, %v1651_v61 }
 0x7a5   :  { %2248 = vmatprep.subr.mxu0 %v2501_v5 }
 0x7a6   :  { %2249 = vmatpush3.msra.mxu0 %v1650_v42 }
 0x7a7   :  { %2250 = vmatprep.subr.mxu0 %v2501_v5 }
 0x7a8   :  { %2251 = vmatpush3.msra.mxu0 %v1649_v43 }
 0x7a9   :  { %2253 = vmatmul.mubr.msk.f32.vlgmr.msra.gmra.mxu0 %vm684_vm14, %v1899_v44  ;;  %2255 = vmatprep.subr.mxu0 %v2501_v5 }
 0x7aa   :  { %2257 = vmatprep.mubr.msk.f32.mxu0 %vm2502_vm3, %v2501_v5 }
 0x869   :  { %v1734_v1 = vpop.f32.mrf.mxu0 }
 0x86a   :  { %v1744_v45 = vmul.f32 %v1742_v50, %v1734_v1 }
 0x86b   :  { %v2254_v3 = vpop.f32.mrf.mxu0 }
 0x86c   :  { %2256 = vmatpush3.xpose.msk.msra.mxu0 %vm309_vm13, %v1744_v45 }
 0x86f   :  { %2258 = vmatmul.mubr.msk.f32.vlgmr.msra.gmra.mxu0 %vm309_vm13, %v1745_v46 }
 0x92f   :  { %v1818_v47 = vpop.f32.mrf.mxu0 }
 0x930   :  { %1823 = vst.msk [vmem:[#allocation19] sm:$0x1] %vm1822_vm4, %v1818_v47 }
 0x931   :  { %v2259_v48 = vpop.f32.mrf.mxu0 }
 0x932   :  { %2468 = shalt.err (!%p2465_p7)
}
 0x933   :  { %1833 = dma.vmem_to_hbm [thread:$0]  %s1831_s1, 16, %s3093_s26, [#allocation6]  }
 0x934   :  { %2487 = dma.done.wait [#allocation6], 16  }
 0x935   :  { %2488 = vsyncadd [#allocation6], 4294967280 }
 0x936   :  { %1837 = vsyncpa [#allocation5], 1 }
 0x937   :  { %1838 = vsyncpa [#allocation8], 1 }
 0x938   :  { %1839 = vsyncpa [#allocation11], 1 }
 0x939   :  { %1840 = vsyncpa [#allocation14], 1 }
 0x93a   :  { %1841 = vsyncpa [#allocation17], 1 }
 0x93b   :  { %1842 = vsyncpa [#allocation6], 1 }

</bundles_post_ra>
